<compile_context>
chip_gen: v7x
topology: tpu7x:2x2x1
jax: 0.10.0
libtpu: 0.0.40
codegen_flags: <defaults>
</compile_context>

<pallas_src>
import numpy as np

import jax
import jax.numpy as jnp
from jax import lax
from jax.experimental import pallas as pl
from jax.experimental.pallas import tpu as pltpu  # noqa: F401  (TPU backend)

BN_EPS = 1e-5

# Representative FastGAN discriminator config (what parse_model would build).
# [arg_index, layer_type, layer_args]
CFG = [
    [-1, 'Conv', [3, 8, 4, 2, 1]],     # Conv2d(3, 8, k=4, s=2, p=1)
    [0, 'LeakyReLU', 0.2],
    [1, 'Conv', [8, 16, 4, 2, 1]],     # Conv2d(8, 16, k=4, s=2, p=1)
    [2, 'BatchNorm', 16],
    [3, 'LeakyReLU', 0.2],
    [4, 'Conv', [16, 1, 4, 1, 0]],     # Conv2d(16, 1, k=4, s=1, p=0) -> (B,1,1,1)
]


def _arg0(layer_cfg):
    a = layer_cfg[0]
    return a[0] if isinstance(a, list) else a


# ---------------------------------------------------------------------------
# Static planning: per-layer shapes + selection ("one-hot gather") matrices
# ---------------------------------------------------------------------------

def _make_plan(cfg, B, H, W, Cin):
    plan = []
    shapes = {}                      # layer idx -> (H, W, C) of its output
    for i, lc in enumerate(cfg):
        kind = lc[1]
        if i == 0:
            hi, wi, ci = H, W, Cin
            arg = None
        else:
            arg = _arg0(lc)
            hi, wi, ci = shapes[arg]
        if kind == 'Conv':
            cin, cout, k, s, p = lc[2]
            assert cin == ci, (cin, ci)
            ho = (hi + 2 * p - k) // s + 1
            wo = (wi + 2 * p - k) // s + 1
            st = dict(kind='conv_first' if i == 0 else 'conv', arg=arg,
                      k=k, s=s, p=p, cin=cin, cout=cout,
                      Hi=hi, Wi=wi, Ho=ho, Wo=wo,
                      M=B * ho * wo, C=cout, H=ho, W=wo)
            shapes[i] = (ho, wo, cout)
        elif kind == 'BatchNorm':
            st = dict(kind='bn', arg=arg, C=ci, M=B * hi * wi, H=hi, W=wi)
            shapes[i] = (hi, wi, ci)
        elif kind == 'LeakyReLU':
            st = dict(kind='lrelu', arg=arg, slope=float(lc[2]),
                      C=ci, M=B * hi * wi, H=hi, W=wi)
            shapes[i] = (hi, wi, ci)
        else:
            raise ValueError(kind)
        plan.append(st)
    return plan


def _selection_matrices(B, Hi, Wi, Ho, Wo, k, s, p):
    """S[t] is a 0/1 matrix mapping flattened (b,i,j) input rows to flattened
    (b,oi,oj) output rows for conv tap t = kh*k + kw.  Out-of-bounds taps
    (spatial zero-padding) are all-zero rows."""
    taps = k * k
    S = np.zeros((taps, B * Ho * Wo, B * Hi * Wi), np.float32)
    for kh in range(k):
        for kw in range(k):
            t = kh * k + kw
            for b in range(B):
                for oi in range(Ho):
                    ii = s * oi + kh - p
                    if ii < 0 or ii >= Hi:
                        continue
                    for oj in range(Wo):
                        jj = s * oj + kw - p
                        if jj < 0 or jj >= Wi:
                            continue
                        S[t, b * Ho * Wo + oi * Wo + oj,
                          b * Hi * Wi + ii * Wi + jj] = 1.0
    return S


def _im2col_first(x_nhwc, k, s, p):
    """Wrapper-side im2col for the first conv only (external input, tiny)."""
    x = jnp.pad(x_nhwc, ((0, 0), (p, p), (p, p), (0, 0)))
    B, Hp, Wp, C = x.shape
    Ho = (Hp - k) // s + 1
    Wo = (Wp - k) // s + 1
    cols = [x[:, kh:kh + s * Ho:s, kw:kw + s * Wo:s, :]
            for kh in range(k) for kw in range(k)]
    patches = jnp.concatenate(cols, axis=-1)             # (B,Ho,Wo,k*k*C)
    return patches.reshape(B * Ho * Wo, k * k * C)


# ---------------------------------------------------------------------------
# The fused whole-network kernel
# ---------------------------------------------------------------------------

def _build_kernel(plan, crop, n_in):
    last = len(plan) - 1
    crop = tuple(crop)

    def kernel(*refs):
        in_refs = refs[:n_in]
        out_refs = refs[n_in:]
        pos = [0]

        def take():
            r = in_refs[pos[0]]
            pos[0] += 1
            return r

        outs = {}
        for i, st in enumerate(plan):
            kind = st['kind']
            if kind == 'conv_first':
                p_ref, w_ref, b_ref = take(), take(), take()
                y = jnp.dot(p_ref[...], w_ref[...],
                            preferred_element_type=jnp.float32)
                y = y + b_ref[...]
            elif kind == 'conv':
                s_ref, w_ref, b_ref = take(), take(), take()
                x = outs[st['arg']]
                taps = st['k'] * st['k']
                acc = None
                for t in range(taps):
                    # one-hot gather of the tap's input rows, on the MXU
                    g = jnp.dot(s_ref[t], x, preferred_element_type=jnp.float32)
                    if st['cout'] == 1:
                        # (M, Cin) * (1, Cin) -> lane-reduce -> (M, 1)
                        contrib = jnp.sum(g * w_ref[t], axis=1, keepdims=True)
                    else:
                        contrib = jnp.dot(g, w_ref[t],
                                          preferred_element_type=jnp.float32)
                    acc = contrib if acc is None else acc + contrib
                y = acc + b_ref[...]
            elif kind == 'bn':
                g_ref, be_ref = take(), take()
                x = outs[st['arg']]
                m = float(x.shape[0])
                # Training-mode BatchNorm2d: batch mean, biased variance.
                mean = jnp.sum(x, axis=0, keepdims=True) * (1.0 / m)
                var = jnp.sum(x * x, axis=0, keepdims=True) * (1.0 / m) - mean * mean
                var = jnp.maximum(var, 0.0)
                scale = g_ref[...] * lax.rsqrt(var + BN_EPS)
                shift = be_ref[...] - mean * scale
                y = x * scale + shift
            elif kind == 'lrelu':
                x = outs[st['arg']]
                y = jnp.where(x >= 0, x, st['slope'] * x)
            else:
                raise ValueError(kind)
            outs[i] = y

        out_refs[0][...] = outs[last]
        for oi, ci in enumerate(crop):
            out_refs[1 + oi][...] = outs[ci]

    return kernel


# ---------------------------------------------------------------------------
# Parameter init + forward (mirrors the PyTorch forward loop semantics)
# ---------------------------------------------------------------------------

def init_params(key):
    params = []
    for layer_cfg in CFG:
        kind = layer_cfg[1]
        if kind == 'Conv':
            cin, cout, k, _, _ = layer_cfg[2]
            key, kw, kb = jax.random.split(key, 3)
            params.append({
                'w': 0.05 * jax.random.normal(kw, (cout, cin, k, k), jnp.float32),
                'b': 0.05 * jax.random.normal(kb, (cout,), jnp.float32),
            })
        elif kind == 'BatchNorm':
            c = layer_cfg[2]
            params.append({
                'gamma': jnp.ones((c,), jnp.float32),
                'beta': jnp.zeros((c,), jnp.float32),
            })
        else:
            params.append(None)
    return params


def discriminator_forward(params, x_nchw, crop=None):
    B, Cin, H, W = x_nchw.shape
    plan = _make_plan(CFG, B, H, W, Cin)
    crop_t = tuple(crop) if crop is not None else ()

    x_nhwc = jnp.transpose(x_nchw, (0, 2, 3, 1))

    # ---- flat kernel-input list (order must match the kernel builder) ----
    inputs = []
    for i, st in enumerate(plan):
        if st['kind'] == 'conv_first':
            patches = _im2col_first(x_nhwc, st['k'], st['s'], st['p'])
            wmat = jnp.transpose(params[i]['w'], (2, 3, 1, 0)).reshape(
                st['k'] * st['k'] * st['cin'], st['cout'])
            bias = params[i]['b'].reshape(1, st['cout'])
            inputs += [patches.astype(jnp.float32),
                       wmat.astype(jnp.float32),
                       bias.astype(jnp.float32)]
        elif st['kind'] == 'conv':
            S = jnp.asarray(_selection_matrices(
                B, st['Hi'], st['Wi'], st['Ho'], st['Wo'],
                st['k'], st['s'], st['p']))
            wtaps = jnp.transpose(params[i]['w'], (2, 3, 1, 0)).reshape(
                st['k'] * st['k'], st['cin'], st['cout'])
            if st['cout'] == 1:
                wtaps = jnp.transpose(wtaps, (0, 2, 1))   # (taps, 1, cin)
            bias = params[i]['b'].reshape(1, st['cout'])
            inputs += [S, wtaps.astype(jnp.float32), bias.astype(jnp.float32)]
        elif st['kind'] == 'bn':
            inputs += [params[i]['gamma'].reshape(1, -1).astype(jnp.float32),
                       params[i]['beta'].reshape(1, -1).astype(jnp.float32)]
        # lrelu: no parameters

    out_shapes = [jax.ShapeDtypeStruct((plan[-1]['M'], plan[-1]['C']), jnp.float32)]
    for ci in crop_t:
        out_shapes.append(
            jax.ShapeDtypeStruct((plan[ci]['M'], plan[ci]['C']), jnp.float32))

    kernel = _build_kernel(plan, crop_t, len(inputs))
    # Grid-less single invocation: every operand/output is a whole-array VMEM
    # block (total footprint < 0.5 MB).  Single-TC execution is intentional at
    # this size (latency-bound; nothing to shard across v7x's two TCs).
    outs = pl.pallas_call(kernel, out_shape=tuple(out_shapes))(*inputs)

    def _to_nchw(slab, st):
        return jnp.transpose(slab.reshape(B, st['H'], st['W'], st['C']),
                             (0, 3, 1, 2))

    final = _to_nchw(outs[0], plan[-1])
    crops = None
    if crop is not None:
        crops = [_to_nchw(outs[1 + oi], plan[ci]) for oi, ci in enumerate(crop_t)]
    return final, crops


# ---------------------------------------------------------------------------
# Pure-JAX reference (for a loose correctness check)
# ---------------------------------------------------------------------------

def _reference_forward(params, x_nchw):
    outputs = []
    for i, lc in enumerate(CFG):
        kind = lc[1]
        inp = x_nchw if i == 0 else outputs[_arg0(lc)]
        if kind == 'Conv':
            cin, cout, k, s, p = lc[2]
            out = lax.conv_general_dilated(
                inp, params[i]['w'], window_strides=(s, s),
                padding=((p, p), (p, p)),
                dimension_numbers=('NCHW', 'OIHW', 'NCHW'),
                precision=lax.Precision.HIGHEST)
            out = out + params[i]['b'].reshape(1, cout, 1, 1)
        elif kind == 'BatchNorm':
            c = lc[2]
            mean = jnp.mean(inp, axis=(0, 2, 3), keepdims=True)
            var = jnp.mean((inp - mean) ** 2, axis=(0, 2, 3), keepdims=True)
            out = (inp - mean) * lax.rsqrt(var + BN_EPS)
            out = out * params[i]['gamma'].reshape(1, c, 1, 1) \
                  + params[i]['beta'].reshape(1, c, 1, 1)
        elif kind == 'LeakyReLU':
            out = jnp.where(inp >= 0, inp, lc[2] * inp)
        else:
            raise ValueError(kind)
        outputs.append(out)
    return outputs[-1]


if __name__ == "__main__":
    key = jax.random.PRNGKey(0)
    key, kx = jax.random.split(key)
    x = jax.random.normal(kx, (2, 3, 16, 16), jnp.float32)    # NCHW input

    params = init_params(key)

    fwd = jax.jit(lambda p, xx: discriminator_forward(p, xx)[0])
    out = jax.block_until_ready(fwd(params, x))

    assert out.shape == (2, 1, 1, 1), out.shape
    assert bool(jnp.all(jnp.isfinite(out)))

    ref = jax.block_until_ready(jax.jit(_reference_forward)(params, x))
    max_err = float(jnp.max(jnp.abs(out - ref)))
    assert max_err < 1e-2, f"max abs err vs reference: {max_err}"

    print("KERNEL_OK")
</pallas_src>

<mosaic_0001>
module attributes {stable_mosaic.version = 11 : i64} {
  func.func @kernel(%arg0: memref<128x48xf32, #tpu.memory_space<vmem>>, %arg1: memref<48x8xf32, #tpu.memory_space<vmem>>, %arg2: memref<1x8xf32, #tpu.memory_space<vmem>>, %arg3: memref<16x32x128xf32, #tpu.memory_space<vmem>>, %arg4: memref<16x8x16xf32, #tpu.memory_space<vmem>>, %arg5: memref<1x16xf32, #tpu.memory_space<vmem>>, %arg6: memref<1x16xf32, #tpu.memory_space<vmem>>, %arg7: memref<1x16xf32, #tpu.memory_space<vmem>>, %arg8: memref<16x2x32xf32, #tpu.memory_space<vmem>>, %arg9: memref<16x1x16xf32, #tpu.memory_space<vmem>>, %arg10: memref<1x1xf32, #tpu.memory_space<vmem>>, %arg11: memref<2x1xf32, #tpu.memory_space<vmem>>) attributes {dimension_semantics = [], scalar_prefetch = 0 : i64, scratch_operands = 0 : i64, tpu.core_type = #tpu.core_type<tc>} {
    %c0 = arith.constant 0 : index
    %c0_0 = arith.constant 0 : index
    %0 = vector.load %arg0[%c0, %c0_0] : memref<128x48xf32, #tpu.memory_space<vmem>>, vector<128x48xf32>
    %c0_1 = arith.constant 0 : index
    %c0_2 = arith.constant 0 : index
    %1 = vector.load %arg1[%c0_1, %c0_2] : memref<48x8xf32, #tpu.memory_space<vmem>>, vector<48x8xf32>
    %cst = arith.constant dense<0.000000e+00> : vector<128x8xf32>
    %2 = tpu.matmul %0, %1, %cst {dimension_numbers = #tpu.dot_dimension_numbers<[1], [0], [0], [1], [0, 0, 1, 1], [], []>} : vector<128x48xf32>, vector<48x8xf32>, vector<128x8xf32> -> vector<128x8xf32>
    %c0_3 = arith.constant 0 : index
    %c0_4 = arith.constant 0 : index
    %3 = vector.load %arg2[%c0_3, %c0_4] : memref<1x8xf32, #tpu.memory_space<vmem>>, vector<1x8xf32>
    %4 = vector.broadcast %3 : vector<1x8xf32> to vector<128x8xf32>
    %5 = arith.addf %2, %4 : vector<128x8xf32>
    %cst_5 = arith.constant 0.000000e+00 : f32
    %6 = vector.broadcast %cst_5 : f32 to vector<128x8xf32>
    %7 = arith.cmpf oge, %5, %6 : vector<128x8xf32>
    %cst_6 = arith.constant 2.000000e-01 : f32
    %8 = vector.broadcast %cst_6 : f32 to vector<128x8xf32>
    %9 = arith.mulf %8, %5 : vector<128x8xf32>
    %10 = arith.select %7, %5, %9 : vector<128x8xi1>, vector<128x8xf32>
    %c0_7 = arith.constant 0 : index
    %c0_8 = arith.constant 0 : index
    %c0_9 = arith.constant 0 : index
    %11 = vector.load %arg3[%c0_7, %c0_8, %c0_9] : memref<16x32x128xf32, #tpu.memory_space<vmem>>, vector<1x32x128xf32>
    %12 = vector.shape_cast %11 : vector<1x32x128xf32> to vector<32x128xf32>
    %cst_10 = arith.constant dense<0.000000e+00> : vector<32x8xf32>
    %13 = tpu.matmul %12, %10, %cst_10 {dimension_numbers = #tpu.dot_dimension_numbers<[1], [0], [0], [1], [0, 0, 1, 1], [], []>} : vector<32x128xf32>, vector<128x8xf32>, vector<32x8xf32> -> vector<32x8xf32>
    %c0_11 = arith.constant 0 : index
    %c0_12 = arith.constant 0 : index
    %c0_13 = arith.constant 0 : index
    %14 = vector.load %arg4[%c0_11, %c0_12, %c0_13] : memref<16x8x16xf32, #tpu.memory_space<vmem>>, vector<1x8x16xf32>
    %15 = vector.shape_cast %14 : vector<1x8x16xf32> to vector<8x16xf32>
    %cst_14 = arith.constant dense<0.000000e+00> : vector<32x16xf32>
    %16 = tpu.matmul %13, %15, %cst_14 {dimension_numbers = #tpu.dot_dimension_numbers<[1], [0], [0], [1], [0, 0, 1, 1], [], []>} : vector<32x8xf32>, vector<8x16xf32>, vector<32x16xf32> -> vector<32x16xf32>
    %c1 = arith.constant 1 : index
    %c0_15 = arith.constant 0 : index
    %c0_16 = arith.constant 0 : index
    %17 = vector.load %arg3[%c1, %c0_15, %c0_16] : memref<16x32x128xf32, #tpu.memory_space<vmem>>, vector<1x32x128xf32>
    %18 = vector.shape_cast %17 : vector<1x32x128xf32> to vector<32x128xf32>
    %cst_17 = arith.constant dense<0.000000e+00> : vector<32x8xf32>
    %19 = tpu.matmul %18, %10, %cst_17 {dimension_numbers = #tpu.dot_dimension_numbers<[1], [0], [0], [1], [0, 0, 1, 1], [], []>} : vector<32x128xf32>, vector<128x8xf32>, vector<32x8xf32> -> vector<32x8xf32>
    %c1_18 = arith.constant 1 : index
    %c0_19 = arith.constant 0 : index
    %c0_20 = arith.constant 0 : index
    %20 = vector.load %arg4[%c1_18, %c0_19, %c0_20] : memref<16x8x16xf32, #tpu.memory_space<vmem>>, vector<1x8x16xf32>
    %21 = vector.shape_cast %20 : vector<1x8x16xf32> to vector<8x16xf32>
    %cst_21 = arith.constant dense<0.000000e+00> : vector<32x16xf32>
    %22 = tpu.matmul %19, %21, %cst_21 {dimension_numbers = #tpu.dot_dimension_numbers<[1], [0], [0], [1], [0, 0, 1, 1], [], []>} : vector<32x8xf32>, vector<8x16xf32>, vector<32x16xf32> -> vector<32x16xf32>
    %23 = arith.addf %16, %22 : vector<32x16xf32>
    %c2 = arith.constant 2 : index
    %c0_22 = arith.constant 0 : index
    %c0_23 = arith.constant 0 : index
    %24 = vector.load %arg3[%c2, %c0_22, %c0_23] : memref<16x32x128xf32, #tpu.memory_space<vmem>>, vector<1x32x128xf32>
    %25 = vector.shape_cast %24 : vector<1x32x128xf32> to vector<32x128xf32>
    %cst_24 = arith.constant dense<0.000000e+00> : vector<32x8xf32>
    %26 = tpu.matmul %25, %10, %cst_24 {dimension_numbers = #tpu.dot_dimension_numbers<[1], [0], [0], [1], [0, 0, 1, 1], [], []>} : vector<32x128xf32>, vector<128x8xf32>, vector<32x8xf32> -> vector<32x8xf32>
    %c2_25 = arith.constant 2 : index
    %c0_26 = arith.constant 0 : index
    %c0_27 = arith.constant 0 : index
    %27 = vector.load %arg4[%c2_25, %c0_26, %c0_27] : memref<16x8x16xf32, #tpu.memory_space<vmem>>, vector<1x8x16xf32>
    %28 = vector.shape_cast %27 : vector<1x8x16xf32> to vector<8x16xf32>
    %cst_28 = arith.constant dense<0.000000e+00> : vector<32x16xf32>
    %29 = tpu.matmul %26, %28, %cst_28 {dimension_numbers = #tpu.dot_dimension_numbers<[1], [0], [0], [1], [0, 0, 1, 1], [], []>} : vector<32x8xf32>, vector<8x16xf32>, vector<32x16xf32> -> vector<32x16xf32>
    %30 = arith.addf %23, %29 : vector<32x16xf32>
    %c3 = arith.constant 3 : index
    %c0_29 = arith.constant 0 : index
    %c0_30 = arith.constant 0 : index
    %31 = vector.load %arg3[%c3, %c0_29, %c0_30] : memref<16x32x128xf32, #tpu.memory_space<vmem>>, vector<1x32x128xf32>
    %32 = vector.shape_cast %31 : vector<1x32x128xf32> to vector<32x128xf32>
    %cst_31 = arith.constant dense<0.000000e+00> : vector<32x8xf32>
    %33 = tpu.matmul %32, %10, %cst_31 {dimension_numbers = #tpu.dot_dimension_numbers<[1], [0], [0], [1], [0, 0, 1, 1], [], []>} : vector<32x128xf32>, vector<128x8xf32>, vector<32x8xf32> -> vector<32x8xf32>
    %c3_32 = arith.constant 3 : index
    %c0_33 = arith.constant 0 : index
    %c0_34 = arith.constant 0 : index
    %34 = vector.load %arg4[%c3_32, %c0_33, %c0_34] : memref<16x8x16xf32, #tpu.memory_space<vmem>>, vector<1x8x16xf32>
    %35 = vector.shape_cast %34 : vector<1x8x16xf32> to vector<8x16xf32>
    %cst_35 = arith.constant dense<0.000000e+00> : vector<32x16xf32>
    %36 = tpu.matmul %33, %35, %cst_35 {dimension_numbers = #tpu.dot_dimension_numbers<[1], [0], [0], [1], [0, 0, 1, 1], [], []>} : vector<32x8xf32>, vector<8x16xf32>, vector<32x16xf32> -> vector<32x16xf32>
    %37 = arith.addf %30, %36 : vector<32x16xf32>
    %c4 = arith.constant 4 : index
    %c0_36 = arith.constant 0 : index
    %c0_37 = arith.constant 0 : index
    %38 = vector.load %arg3[%c4, %c0_36, %c0_37] : memref<16x32x128xf32, #tpu.memory_space<vmem>>, vector<1x32x128xf32>
    %39 = vector.shape_cast %38 : vector<1x32x128xf32> to vector<32x128xf32>
    %cst_38 = arith.constant dense<0.000000e+00> : vector<32x8xf32>
    %40 = tpu.matmul %39, %10, %cst_38 {dimension_numbers = #tpu.dot_dimension_numbers<[1], [0], [0], [1], [0, 0, 1, 1], [], []>} : vector<32x128xf32>, vector<128x8xf32>, vector<32x8xf32> -> vector<32x8xf32>
    %c4_39 = arith.constant 4 : index
    %c0_40 = arith.constant 0 : index
    %c0_41 = arith.constant 0 : index
    %41 = vector.load %arg4[%c4_39, %c0_40, %c0_41] : memref<16x8x16xf32, #tpu.memory_space<vmem>>, vector<1x8x16xf32>
    %42 = vector.shape_cast %41 : vector<1x8x16xf32> to vector<8x16xf32>
    %cst_42 = arith.constant dense<0.000000e+00> : vector<32x16xf32>
    %43 = tpu.matmul %40, %42, %cst_42 {dimension_numbers = #tpu.dot_dimension_numbers<[1], [0], [0], [1], [0, 0, 1, 1], [], []>} : vector<32x8xf32>, vector<8x16xf32>, vector<32x16xf32> -> vector<32x16xf32>
    %44 = arith.addf %37, %43 : vector<32x16xf32>
    %c5 = arith.constant 5 : index
    %c0_43 = arith.constant 0 : index
    %c0_44 = arith.constant 0 : index
    %45 = vector.load %arg3[%c5, %c0_43, %c0_44] : memref<16x32x128xf32, #tpu.memory_space<vmem>>, vector<1x32x128xf32>
    %46 = vector.shape_cast %45 : vector<1x32x128xf32> to vector<32x128xf32>
    %cst_45 = arith.constant dense<0.000000e+00> : vector<32x8xf32>
    %47 = tpu.matmul %46, %10, %cst_45 {dimension_numbers = #tpu.dot_dimension_numbers<[1], [0], [0], [1], [0, 0, 1, 1], [], []>} : vector<32x128xf32>, vector<128x8xf32>, vector<32x8xf32> -> vector<32x8xf32>
    %c5_46 = arith.constant 5 : index
    %c0_47 = arith.constant 0 : index
    %c0_48 = arith.constant 0 : index
    %48 = vector.load %arg4[%c5_46, %c0_47, %c0_48] : memref<16x8x16xf32, #tpu.memory_space<vmem>>, vector<1x8x16xf32>
    %49 = vector.shape_cast %48 : vector<1x8x16xf32> to vector<8x16xf32>
    %cst_49 = arith.constant dense<0.000000e+00> : vector<32x16xf32>
    %50 = tpu.matmul %47, %49, %cst_49 {dimension_numbers = #tpu.dot_dimension_numbers<[1], [0], [0], [1], [0, 0, 1, 1], [], []>} : vector<32x8xf32>, vector<8x16xf32>, vector<32x16xf32> -> vector<32x16xf32>
    %51 = arith.addf %44, %50 : vector<32x16xf32>
    %c6 = arith.constant 6 : index
    %c0_50 = arith.constant 0 : index
    %c0_51 = arith.constant 0 : index
    %52 = vector.load %arg3[%c6, %c0_50, %c0_51] : memref<16x32x128xf32, #tpu.memory_space<vmem>>, vector<1x32x128xf32>
    %53 = vector.shape_cast %52 : vector<1x32x128xf32> to vector<32x128xf32>
    %cst_52 = arith.constant dense<0.000000e+00> : vector<32x8xf32>
    %54 = tpu.matmul %53, %10, %cst_52 {dimension_numbers = #tpu.dot_dimension_numbers<[1], [0], [0], [1], [0, 0, 1, 1], [], []>} : vector<32x128xf32>, vector<128x8xf32>, vector<32x8xf32> -> vector<32x8xf32>
    %c6_53 = arith.constant 6 : index
    %c0_54 = arith.constant 0 : index
    %c0_55 = arith.constant 0 : index
    %55 = vector.load %arg4[%c6_53, %c0_54, %c0_55] : memref<16x8x16xf32, #tpu.memory_space<vmem>>, vector<1x8x16xf32>
    %56 = vector.shape_cast %55 : vector<1x8x16xf32> to vector<8x16xf32>
    %cst_56 = arith.constant dense<0.000000e+00> : vector<32x16xf32>
    %57 = tpu.matmul %54, %56, %cst_56 {dimension_numbers = #tpu.dot_dimension_numbers<[1], [0], [0], [1], [0, 0, 1, 1], [], []>} : vector<32x8xf32>, vector<8x16xf32>, vector<32x16xf32> -> vector<32x16xf32>
    %58 = arith.addf %51, %57 : vector<32x16xf32>
    %c7 = arith.constant 7 : index
    %c0_57 = arith.constant 0 : index
    %c0_58 = arith.constant 0 : index
    %59 = vector.load %arg3[%c7, %c0_57, %c0_58] : memref<16x32x128xf32, #tpu.memory_space<vmem>>, vector<1x32x128xf32>
    %60 = vector.shape_cast %59 : vector<1x32x128xf32> to vector<32x128xf32>
    %cst_59 = arith.constant dense<0.000000e+00> : vector<32x8xf32>
    %61 = tpu.matmul %60, %10, %cst_59 {dimension_numbers = #tpu.dot_dimension_numbers<[1], [0], [0], [1], [0, 0, 1, 1], [], []>} : vector<32x128xf32>, vector<128x8xf32>, vector<32x8xf32> -> vector<32x8xf32>
    %c7_60 = arith.constant 7 : index
    %c0_61 = arith.constant 0 : index
    %c0_62 = arith.constant 0 : index
    %62 = vector.load %arg4[%c7_60, %c0_61, %c0_62] : memref<16x8x16xf32, #tpu.memory_space<vmem>>, vector<1x8x16xf32>
    %63 = vector.shape_cast %62 : vector<1x8x16xf32> to vector<8x16xf32>
    %cst_63 = arith.constant dense<0.000000e+00> : vector<32x16xf32>
    %64 = tpu.matmul %61, %63, %cst_63 {dimension_numbers = #tpu.dot_dimension_numbers<[1], [0], [0], [1], [0, 0, 1, 1], [], []>} : vector<32x8xf32>, vector<8x16xf32>, vector<32x16xf32> -> vector<32x16xf32>
    %65 = arith.addf %58, %64 : vector<32x16xf32>
    %c8 = arith.constant 8 : index
    %c0_64 = arith.constant 0 : index
    %c0_65 = arith.constant 0 : index
    %66 = vector.load %arg3[%c8, %c0_64, %c0_65] : memref<16x32x128xf32, #tpu.memory_space<vmem>>, vector<1x32x128xf32>
    %67 = vector.shape_cast %66 : vector<1x32x128xf32> to vector<32x128xf32>
    %cst_66 = arith.constant dense<0.000000e+00> : vector<32x8xf32>
    %68 = tpu.matmul %67, %10, %cst_66 {dimension_numbers = #tpu.dot_dimension_numbers<[1], [0], [0], [1], [0, 0, 1, 1], [], []>} : vector<32x128xf32>, vector<128x8xf32>, vector<32x8xf32> -> vector<32x8xf32>
    %c8_67 = arith.constant 8 : index
    %c0_68 = arith.constant 0 : index
    %c0_69 = arith.constant 0 : index
    %69 = vector.load %arg4[%c8_67, %c0_68, %c0_69] : memref<16x8x16xf32, #tpu.memory_space<vmem>>, vector<1x8x16xf32>
    %70 = vector.shape_cast %69 : vector<1x8x16xf32> to vector<8x16xf32>
    %cst_70 = arith.constant dense<0.000000e+00> : vector<32x16xf32>
    %71 = tpu.matmul %68, %70, %cst_70 {dimension_numbers = #tpu.dot_dimension_numbers<[1], [0], [0], [1], [0, 0, 1, 1], [], []>} : vector<32x8xf32>, vector<8x16xf32>, vector<32x16xf32> -> vector<32x16xf32>
    %72 = arith.addf %65, %71 : vector<32x16xf32>
    %c9 = arith.constant 9 : index
    %c0_71 = arith.constant 0 : index
    %c0_72 = arith.constant 0 : index
    %73 = vector.load %arg3[%c9, %c0_71, %c0_72] : memref<16x32x128xf32, #tpu.memory_space<vmem>>, vector<1x32x128xf32>
    %74 = vector.shape_cast %73 : vector<1x32x128xf32> to vector<32x128xf32>
    %cst_73 = arith.constant dense<0.000000e+00> : vector<32x8xf32>
    %75 = tpu.matmul %74, %10, %cst_73 {dimension_numbers = #tpu.dot_dimension_numbers<[1], [0], [0], [1], [0, 0, 1, 1], [], []>} : vector<32x128xf32>, vector<128x8xf32>, vector<32x8xf32> -> vector<32x8xf32>
    %c9_74 = arith.constant 9 : index
    %c0_75 = arith.constant 0 : index
    %c0_76 = arith.constant 0 : index
    %76 = vector.load %arg4[%c9_74, %c0_75, %c0_76] : memref<16x8x16xf32, #tpu.memory_space<vmem>>, vector<1x8x16xf32>
    %77 = vector.shape_cast %76 : vector<1x8x16xf32> to vector<8x16xf32>
    %cst_77 = arith.constant dense<0.000000e+00> : vector<32x16xf32>
    %78 = tpu.matmul %75, %77, %cst_77 {dimension_numbers = #tpu.dot_dimension_numbers<[1], [0], [0], [1], [0, 0, 1, 1], [], []>} : vector<32x8xf32>, vector<8x16xf32>, vector<32x16xf32> -> vector<32x16xf32>
    %79 = arith.addf %72, %78 : vector<32x16xf32>
    %c10 = arith.constant 10 : index
    %c0_78 = arith.constant 0 : index
    %c0_79 = arith.constant 0 : index
    %80 = vector.load %arg3[%c10, %c0_78, %c0_79] : memref<16x32x128xf32, #tpu.memory_space<vmem>>, vector<1x32x128xf32>
    %81 = vector.shape_cast %80 : vector<1x32x128xf32> to vector<32x128xf32>
    %cst_80 = arith.constant dense<0.000000e+00> : vector<32x8xf32>
    %82 = tpu.matmul %81, %10, %cst_80 {dimension_numbers = #tpu.dot_dimension_numbers<[1], [0], [0], [1], [0, 0, 1, 1], [], []>} : vector<32x128xf32>, vector<128x8xf32>, vector<32x8xf32> -> vector<32x8xf32>
    %c10_81 = arith.constant 10 : index
    %c0_82 = arith.constant 0 : index
    %c0_83 = arith.constant 0 : index
    %83 = vector.load %arg4[%c10_81, %c0_82, %c0_83] : memref<16x8x16xf32, #tpu.memory_space<vmem>>, vector<1x8x16xf32>
    %84 = vector.shape_cast %83 : vector<1x8x16xf32> to vector<8x16xf32>
    %cst_84 = arith.constant dense<0.000000e+00> : vector<32x16xf32>
    %85 = tpu.matmul %82, %84, %cst_84 {dimension_numbers = #tpu.dot_dimension_numbers<[1], [0], [0], [1], [0, 0, 1, 1], [], []>} : vector<32x8xf32>, vector<8x16xf32>, vector<32x16xf32> -> vector<32x16xf32>
    %86 = arith.addf %79, %85 : vector<32x16xf32>
    %c11 = arith.constant 11 : index
    %c0_85 = arith.constant 0 : index
    %c0_86 = arith.constant 0 : index
    %87 = vector.load %arg3[%c11, %c0_85, %c0_86] : memref<16x32x128xf32, #tpu.memory_space<vmem>>, vector<1x32x128xf32>
    %88 = vector.shape_cast %87 : vector<1x32x128xf32> to vector<32x128xf32>
    %cst_87 = arith.constant dense<0.000000e+00> : vector<32x8xf32>
    %89 = tpu.matmul %88, %10, %cst_87 {dimension_numbers = #tpu.dot_dimension_numbers<[1], [0], [0], [1], [0, 0, 1, 1], [], []>} : vector<32x128xf32>, vector<128x8xf32>, vector<32x8xf32> -> vector<32x8xf32>
    %c11_88 = arith.constant 11 : index
    %c0_89 = arith.constant 0 : index
    %c0_90 = arith.constant 0 : index
    %90 = vector.load %arg4[%c11_88, %c0_89, %c0_90] : memref<16x8x16xf32, #tpu.memory_space<vmem>>, vector<1x8x16xf32>
    %91 = vector.shape_cast %90 : vector<1x8x16xf32> to vector<8x16xf32>
    %cst_91 = arith.constant dense<0.000000e+00> : vector<32x16xf32>
    %92 = tpu.matmul %89, %91, %cst_91 {dimension_numbers = #tpu.dot_dimension_numbers<[1], [0], [0], [1], [0, 0, 1, 1], [], []>} : vector<32x8xf32>, vector<8x16xf32>, vector<32x16xf32> -> vector<32x16xf32>
    %93 = arith.addf %86, %92 : vector<32x16xf32>
    %c12 = arith.constant 12 : index
    %c0_92 = arith.constant 0 : index
    %c0_93 = arith.constant 0 : index
    %94 = vector.load %arg3[%c12, %c0_92, %c0_93] : memref<16x32x128xf32, #tpu.memory_space<vmem>>, vector<1x32x128xf32>
    %95 = vector.shape_cast %94 : vector<1x32x128xf32> to vector<32x128xf32>
    %cst_94 = arith.constant dense<0.000000e+00> : vector<32x8xf32>
    %96 = tpu.matmul %95, %10, %cst_94 {dimension_numbers = #tpu.dot_dimension_numbers<[1], [0], [0], [1], [0, 0, 1, 1], [], []>} : vector<32x128xf32>, vector<128x8xf32>, vector<32x8xf32> -> vector<32x8xf32>
    %c12_95 = arith.constant 12 : index
    %c0_96 = arith.constant 0 : index
    %c0_97 = arith.constant 0 : index
    %97 = vector.load %arg4[%c12_95, %c0_96, %c0_97] : memref<16x8x16xf32, #tpu.memory_space<vmem>>, vector<1x8x16xf32>
    %98 = vector.shape_cast %97 : vector<1x8x16xf32> to vector<8x16xf32>
    %cst_98 = arith.constant dense<0.000000e+00> : vector<32x16xf32>
    %99 = tpu.matmul %96, %98, %cst_98 {dimension_numbers = #tpu.dot_dimension_numbers<[1], [0], [0], [1], [0, 0, 1, 1], [], []>} : vector<32x8xf32>, vector<8x16xf32>, vector<32x16xf32> -> vector<32x16xf32>
    %100 = arith.addf %93, %99 : vector<32x16xf32>
    %c13 = arith.constant 13 : index
    %c0_99 = arith.constant 0 : index
    %c0_100 = arith.constant 0 : index
    %101 = vector.load %arg3[%c13, %c0_99, %c0_100] : memref<16x32x128xf32, #tpu.memory_space<vmem>>, vector<1x32x128xf32>
    %102 = vector.shape_cast %101 : vector<1x32x128xf32> to vector<32x128xf32>
    %cst_101 = arith.constant dense<0.000000e+00> : vector<32x8xf32>
    %103 = tpu.matmul %102, %10, %cst_101 {dimension_numbers = #tpu.dot_dimension_numbers<[1], [0], [0], [1], [0, 0, 1, 1], [], []>} : vector<32x128xf32>, vector<128x8xf32>, vector<32x8xf32> -> vector<32x8xf32>
    %c13_102 = arith.constant 13 : index
    %c0_103 = arith.constant 0 : index
    %c0_104 = arith.constant 0 : index
    %104 = vector.load %arg4[%c13_102, %c0_103, %c0_104] : memref<16x8x16xf32, #tpu.memory_space<vmem>>, vector<1x8x16xf32>
    %105 = vector.shape_cast %104 : vector<1x8x16xf32> to vector<8x16xf32>
    %cst_105 = arith.constant dense<0.000000e+00> : vector<32x16xf32>
    %106 = tpu.matmul %103, %105, %cst_105 {dimension_numbers = #tpu.dot_dimension_numbers<[1], [0], [0], [1], [0, 0, 1, 1], [], []>} : vector<32x8xf32>, vector<8x16xf32>, vector<32x16xf32> -> vector<32x16xf32>
    %107 = arith.addf %100, %106 : vector<32x16xf32>
    %c14 = arith.constant 14 : index
    %c0_106 = arith.constant 0 : index
    %c0_107 = arith.constant 0 : index
    %108 = vector.load %arg3[%c14, %c0_106, %c0_107] : memref<16x32x128xf32, #tpu.memory_space<vmem>>, vector<1x32x128xf32>
    %109 = vector.shape_cast %108 : vector<1x32x128xf32> to vector<32x128xf32>
    %cst_108 = arith.constant dense<0.000000e+00> : vector<32x8xf32>
    %110 = tpu.matmul %109, %10, %cst_108 {dimension_numbers = #tpu.dot_dimension_numbers<[1], [0], [0], [1], [0, 0, 1, 1], [], []>} : vector<32x128xf32>, vector<128x8xf32>, vector<32x8xf32> -> vector<32x8xf32>
    %c14_109 = arith.constant 14 : index
    %c0_110 = arith.constant 0 : index
    %c0_111 = arith.constant 0 : index
    %111 = vector.load %arg4[%c14_109, %c0_110, %c0_111] : memref<16x8x16xf32, #tpu.memory_space<vmem>>, vector<1x8x16xf32>
    %112 = vector.shape_cast %111 : vector<1x8x16xf32> to vector<8x16xf32>
    %cst_112 = arith.constant dense<0.000000e+00> : vector<32x16xf32>
    %113 = tpu.matmul %110, %112, %cst_112 {dimension_numbers = #tpu.dot_dimension_numbers<[1], [0], [0], [1], [0, 0, 1, 1], [], []>} : vector<32x8xf32>, vector<8x16xf32>, vector<32x16xf32> -> vector<32x16xf32>
    %114 = arith.addf %107, %113 : vector<32x16xf32>
    %c15 = arith.constant 15 : index
    %c0_113 = arith.constant 0 : index
    %c0_114 = arith.constant 0 : index
    %115 = vector.load %arg3[%c15, %c0_113, %c0_114] : memref<16x32x128xf32, #tpu.memory_space<vmem>>, vector<1x32x128xf32>
    %116 = vector.shape_cast %115 : vector<1x32x128xf32> to vector<32x128xf32>
    %cst_115 = arith.constant dense<0.000000e+00> : vector<32x8xf32>
    %117 = tpu.matmul %116, %10, %cst_115 {dimension_numbers = #tpu.dot_dimension_numbers<[1], [0], [0], [1], [0, 0, 1, 1], [], []>} : vector<32x128xf32>, vector<128x8xf32>, vector<32x8xf32> -> vector<32x8xf32>
    %c15_116 = arith.constant 15 : index
    %c0_117 = arith.constant 0 : index
    %c0_118 = arith.constant 0 : index
    %118 = vector.load %arg4[%c15_116, %c0_117, %c0_118] : memref<16x8x16xf32, #tpu.memory_space<vmem>>, vector<1x8x16xf32>
    %119 = vector.shape_cast %118 : vector<1x8x16xf32> to vector<8x16xf32>
    %cst_119 = arith.constant dense<0.000000e+00> : vector<32x16xf32>
    %120 = tpu.matmul %117, %119, %cst_119 {dimension_numbers = #tpu.dot_dimension_numbers<[1], [0], [0], [1], [0, 0, 1, 1], [], []>} : vector<32x8xf32>, vector<8x16xf32>, vector<32x16xf32> -> vector<32x16xf32>
    %121 = arith.addf %114, %120 : vector<32x16xf32>
    %c0_120 = arith.constant 0 : index
    %c0_121 = arith.constant 0 : index
    %122 = vector.load %arg5[%c0_120, %c0_121] : memref<1x16xf32, #tpu.memory_space<vmem>>, vector<1x16xf32>
    %123 = vector.broadcast %122 : vector<1x16xf32> to vector<32x16xf32>
    %124 = arith.addf %121, %123 : vector<32x16xf32>
    %cst_122 = arith.constant dense<0.000000e+00> : vector<16xf32>
    %125 = vector.multi_reduction <add>, %124, %cst_122 [0] : vector<32x16xf32> to vector<16xf32>
    %126 = vector.shape_cast %125 : vector<16xf32> to vector<1x16xf32>
    %cst_123 = arith.constant 3.125000e-02 : f32
    %127 = vector.broadcast %cst_123 : f32 to vector<1x16xf32>
    %128 = arith.mulf %126, %127 : vector<1x16xf32>
    %129 = arith.mulf %124, %124 : vector<32x16xf32>
    %cst_124 = arith.constant dense<0.000000e+00> : vector<16xf32>
    %130 = vector.multi_reduction <add>, %129, %cst_124 [0] : vector<32x16xf32> to vector<16xf32>
    %131 = vector.shape_cast %130 : vector<16xf32> to vector<1x16xf32>
    %cst_125 = arith.constant 3.125000e-02 : f32
    %132 = vector.broadcast %cst_125 : f32 to vector<1x16xf32>
    %133 = arith.mulf %131, %132 : vector<1x16xf32>
    %134 = arith.mulf %128, %128 : vector<1x16xf32>
    %135 = arith.subf %133, %134 : vector<1x16xf32>
    %cst_126 = arith.constant 0.000000e+00 : f32
    %136 = vector.broadcast %cst_126 : f32 to vector<1x16xf32>
    %137 = arith.maximumf %135, %136 : vector<1x16xf32>
    %c0_127 = arith.constant 0 : index
    %c0_128 = arith.constant 0 : index
    %138 = vector.load %arg6[%c0_127, %c0_128] : memref<1x16xf32, #tpu.memory_space<vmem>>, vector<1x16xf32>
    %cst_129 = arith.constant 9.99999974E-6 : f32
    %139 = vector.broadcast %cst_129 : f32 to vector<1x16xf32>
    %140 = arith.addf %137, %139 : vector<1x16xf32>
    %141 = math.rsqrt %140 : vector<1x16xf32>
    %142 = arith.mulf %138, %141 : vector<1x16xf32>
    %c0_130 = arith.constant 0 : index
    %c0_131 = arith.constant 0 : index
    %143 = vector.load %arg7[%c0_130, %c0_131] : memref<1x16xf32, #tpu.memory_space<vmem>>, vector<1x16xf32>
    %144 = arith.mulf %128, %142 : vector<1x16xf32>
    %145 = arith.subf %143, %144 : vector<1x16xf32>
    %146 = vector.broadcast %142 : vector<1x16xf32> to vector<32x16xf32>
    %147 = arith.mulf %124, %146 : vector<32x16xf32>
    %148 = vector.broadcast %145 : vector<1x16xf32> to vector<32x16xf32>
    %149 = arith.addf %147, %148 : vector<32x16xf32>
    %cst_132 = arith.constant 0.000000e+00 : f32
    %150 = vector.broadcast %cst_132 : f32 to vector<32x16xf32>
    %151 = arith.cmpf oge, %149, %150 : vector<32x16xf32>
    %cst_133 = arith.constant 2.000000e-01 : f32
    %152 = vector.broadcast %cst_133 : f32 to vector<32x16xf32>
    %153 = arith.mulf %152, %149 : vector<32x16xf32>
    %154 = arith.select %151, %149, %153 : vector<32x16xi1>, vector<32x16xf32>
    %c0_134 = arith.constant 0 : index
    %c0_135 = arith.constant 0 : index
    %c0_136 = arith.constant 0 : index
    %155 = vector.load %arg8[%c0_134, %c0_135, %c0_136] : memref<16x2x32xf32, #tpu.memory_space<vmem>>, vector<1x2x32xf32>
    %156 = vector.shape_cast %155 : vector<1x2x32xf32> to vector<2x32xf32>
    %cst_137 = arith.constant dense<0.000000e+00> : vector<2x16xf32>
    %157 = tpu.matmul %156, %154, %cst_137 {dimension_numbers = #tpu.dot_dimension_numbers<[1], [0], [0], [1], [0, 0, 1, 1], [], []>} : vector<2x32xf32>, vector<32x16xf32>, vector<2x16xf32> -> vector<2x16xf32>
    %c0_138 = arith.constant 0 : index
    %c0_139 = arith.constant 0 : index
    %c0_140 = arith.constant 0 : index
    %158 = vector.load %arg9[%c0_138, %c0_139, %c0_140] : memref<16x1x16xf32, #tpu.memory_space<vmem>>, vector<1x1x16xf32>
    %159 = vector.shape_cast %158 : vector<1x1x16xf32> to vector<1x16xf32>
    %160 = vector.broadcast %159 : vector<1x16xf32> to vector<2x16xf32>
    %161 = arith.mulf %157, %160 : vector<2x16xf32>
    %cst_141 = arith.constant dense<0.000000e+00> : vector<2xf32>
    %162 = vector.multi_reduction <add>, %161, %cst_141 [1] : vector<2x16xf32> to vector<2xf32>
    %163 = vector.shape_cast %162 : vector<2xf32> to vector<2x1xf32>
    %c1_142 = arith.constant 1 : index
    %c0_143 = arith.constant 0 : index
    %c0_144 = arith.constant 0 : index
    %164 = vector.load %arg8[%c1_142, %c0_143, %c0_144] : memref<16x2x32xf32, #tpu.memory_space<vmem>>, vector<1x2x32xf32>
    %165 = vector.shape_cast %164 : vector<1x2x32xf32> to vector<2x32xf32>
    %cst_145 = arith.constant dense<0.000000e+00> : vector<2x16xf32>
    %166 = tpu.matmul %165, %154, %cst_145 {dimension_numbers = #tpu.dot_dimension_numbers<[1], [0], [0], [1], [0, 0, 1, 1], [], []>} : vector<2x32xf32>, vector<32x16xf32>, vector<2x16xf32> -> vector<2x16xf32>
    %c1_146 = arith.constant 1 : index
    %c0_147 = arith.constant 0 : index
    %c0_148 = arith.constant 0 : index
    %167 = vector.load %arg9[%c1_146, %c0_147, %c0_148] : memref<16x1x16xf32, #tpu.memory_space<vmem>>, vector<1x1x16xf32>
    %168 = vector.shape_cast %167 : vector<1x1x16xf32> to vector<1x16xf32>
    %169 = vector.broadcast %168 : vector<1x16xf32> to vector<2x16xf32>
    %170 = arith.mulf %166, %169 : vector<2x16xf32>
    %cst_149 = arith.constant dense<0.000000e+00> : vector<2xf32>
    %171 = vector.multi_reduction <add>, %170, %cst_149 [1] : vector<2x16xf32> to vector<2xf32>
    %172 = vector.shape_cast %171 : vector<2xf32> to vector<2x1xf32>
    %173 = arith.addf %163, %172 : vector<2x1xf32>
    %c2_150 = arith.constant 2 : index
    %c0_151 = arith.constant 0 : index
    %c0_152 = arith.constant 0 : index
    %174 = vector.load %arg8[%c2_150, %c0_151, %c0_152] : memref<16x2x32xf32, #tpu.memory_space<vmem>>, vector<1x2x32xf32>
    %175 = vector.shape_cast %174 : vector<1x2x32xf32> to vector<2x32xf32>
    %cst_153 = arith.constant dense<0.000000e+00> : vector<2x16xf32>
    %176 = tpu.matmul %175, %154, %cst_153 {dimension_numbers = #tpu.dot_dimension_numbers<[1], [0], [0], [1], [0, 0, 1, 1], [], []>} : vector<2x32xf32>, vector<32x16xf32>, vector<2x16xf32> -> vector<2x16xf32>
    %c2_154 = arith.constant 2 : index
    %c0_155 = arith.constant 0 : index
    %c0_156 = arith.constant 0 : index
    %177 = vector.load %arg9[%c2_154, %c0_155, %c0_156] : memref<16x1x16xf32, #tpu.memory_space<vmem>>, vector<1x1x16xf32>
    %178 = vector.shape_cast %177 : vector<1x1x16xf32> to vector<1x16xf32>
    %179 = vector.broadcast %178 : vector<1x16xf32> to vector<2x16xf32>
    %180 = arith.mulf %176, %179 : vector<2x16xf32>
    %cst_157 = arith.constant dense<0.000000e+00> : vector<2xf32>
    %181 = vector.multi_reduction <add>, %180, %cst_157 [1] : vector<2x16xf32> to vector<2xf32>
    %182 = vector.shape_cast %181 : vector<2xf32> to vector<2x1xf32>
    %183 = arith.addf %173, %182 : vector<2x1xf32>
    %c3_158 = arith.constant 3 : index
    %c0_159 = arith.constant 0 : index
    %c0_160 = arith.constant 0 : index
    %184 = vector.load %arg8[%c3_158, %c0_159, %c0_160] : memref<16x2x32xf32, #tpu.memory_space<vmem>>, vector<1x2x32xf32>
    %185 = vector.shape_cast %184 : vector<1x2x32xf32> to vector<2x32xf32>
    %cst_161 = arith.constant dense<0.000000e+00> : vector<2x16xf32>
    %186 = tpu.matmul %185, %154, %cst_161 {dimension_numbers = #tpu.dot_dimension_numbers<[1], [0], [0], [1], [0, 0, 1, 1], [], []>} : vector<2x32xf32>, vector<32x16xf32>, vector<2x16xf32> -> vector<2x16xf32>
    %c3_162 = arith.constant 3 : index
    %c0_163 = arith.constant 0 : index
    %c0_164 = arith.constant 0 : index
    %187 = vector.load %arg9[%c3_162, %c0_163, %c0_164] : memref<16x1x16xf32, #tpu.memory_space<vmem>>, vector<1x1x16xf32>
    %188 = vector.shape_cast %187 : vector<1x1x16xf32> to vector<1x16xf32>
    %189 = vector.broadcast %188 : vector<1x16xf32> to vector<2x16xf32>
    %190 = arith.mulf %186, %189 : vector<2x16xf32>
    %cst_165 = arith.constant dense<0.000000e+00> : vector<2xf32>
    %191 = vector.multi_reduction <add>, %190, %cst_165 [1] : vector<2x16xf32> to vector<2xf32>
    %192 = vector.shape_cast %191 : vector<2xf32> to vector<2x1xf32>
    %193 = arith.addf %183, %192 : vector<2x1xf32>
    %c4_166 = arith.constant 4 : index
    %c0_167 = arith.constant 0 : index
    %c0_168 = arith.constant 0 : index
    %194 = vector.load %arg8[%c4_166, %c0_167, %c0_168] : memref<16x2x32xf32, #tpu.memory_space<vmem>>, vector<1x2x32xf32>
    %195 = vector.shape_cast %194 : vector<1x2x32xf32> to vector<2x32xf32>
    %cst_169 = arith.constant dense<0.000000e+00> : vector<2x16xf32>
    %196 = tpu.matmul %195, %154, %cst_169 {dimension_numbers = #tpu.dot_dimension_numbers<[1], [0], [0], [1], [0, 0, 1, 1], [], []>} : vector<2x32xf32>, vector<32x16xf32>, vector<2x16xf32> -> vector<2x16xf32>
    %c4_170 = arith.constant 4 : index
    %c0_171 = arith.constant 0 : index
    %c0_172 = arith.constant 0 : index
    %197 = vector.load %arg9[%c4_170, %c0_171, %c0_172] : memref<16x1x16xf32, #tpu.memory_space<vmem>>, vector<1x1x16xf32>
    %198 = vector.shape_cast %197 : vector<1x1x16xf32> to vector<1x16xf32>
    %199 = vector.broadcast %198 : vector<1x16xf32> to vector<2x16xf32>
    %200 = arith.mulf %196, %199 : vector<2x16xf32>
    %cst_173 = arith.constant dense<0.000000e+00> : vector<2xf32>
    %201 = vector.multi_reduction <add>, %200, %cst_173 [1] : vector<2x16xf32> to vector<2xf32>
    %202 = vector.shape_cast %201 : vector<2xf32> to vector<2x1xf32>
    %203 = arith.addf %193, %202 : vector<2x1xf32>
    %c5_174 = arith.constant 5 : index
    %c0_175 = arith.constant 0 : index
    %c0_176 = arith.constant 0 : index
    %204 = vector.load %arg8[%c5_174, %c0_175, %c0_176] : memref<16x2x32xf32, #tpu.memory_space<vmem>>, vector<1x2x32xf32>
    %205 = vector.shape_cast %204 : vector<1x2x32xf32> to vector<2x32xf32>
    %cst_177 = arith.constant dense<0.000000e+00> : vector<2x16xf32>
    %206 = tpu.matmul %205, %154, %cst_177 {dimension_numbers = #tpu.dot_dimension_numbers<[1], [0], [0], [1], [0, 0, 1, 1], [], []>} : vector<2x32xf32>, vector<32x16xf32>, vector<2x16xf32> -> vector<2x16xf32>
    %c5_178 = arith.constant 5 : index
    %c0_179 = arith.constant 0 : index
    %c0_180 = arith.constant 0 : index
    %207 = vector.load %arg9[%c5_178, %c0_179, %c0_180] : memref<16x1x16xf32, #tpu.memory_space<vmem>>, vector<1x1x16xf32>
    %208 = vector.shape_cast %207 : vector<1x1x16xf32> to vector<1x16xf32>
    %209 = vector.broadcast %208 : vector<1x16xf32> to vector<2x16xf32>
    %210 = arith.mulf %206, %209 : vector<2x16xf32>
    %cst_181 = arith.constant dense<0.000000e+00> : vector<2xf32>
    %211 = vector.multi_reduction <add>, %210, %cst_181 [1] : vector<2x16xf32> to vector<2xf32>
    %212 = vector.shape_cast %211 : vector<2xf32> to vector<2x1xf32>
    %213 = arith.addf %203, %212 : vector<2x1xf32>
    %c6_182 = arith.constant 6 : index
    %c0_183 = arith.constant 0 : index
    %c0_184 = arith.constant 0 : index
    %214 = vector.load %arg8[%c6_182, %c0_183, %c0_184] : memref<16x2x32xf32, #tpu.memory_space<vmem>>, vector<1x2x32xf32>
    %215 = vector.shape_cast %214 : vector<1x2x32xf32> to vector<2x32xf32>
    %cst_185 = arith.constant dense<0.000000e+00> : vector<2x16xf32>
    %216 = tpu.matmul %215, %154, %cst_185 {dimension_numbers = #tpu.dot_dimension_numbers<[1], [0], [0], [1], [0, 0, 1, 1], [], []>} : vector<2x32xf32>, vector<32x16xf32>, vector<2x16xf32> -> vector<2x16xf32>
    %c6_186 = arith.constant 6 : index
    %c0_187 = arith.constant 0 : index
    %c0_188 = arith.constant 0 : index
    %217 = vector.load %arg9[%c6_186, %c0_187, %c0_188] : memref<16x1x16xf32, #tpu.memory_space<vmem>>, vector<1x1x16xf32>
    %218 = vector.shape_cast %217 : vector<1x1x16xf32> to vector<1x16xf32>
    %219 = vector.broadcast %218 : vector<1x16xf32> to vector<2x16xf32>
    %220 = arith.mulf %216, %219 : vector<2x16xf32>
    %cst_189 = arith.constant dense<0.000000e+00> : vector<2xf32>
    %221 = vector.multi_reduction <add>, %220, %cst_189 [1] : vector<2x16xf32> to vector<2xf32>
    %222 = vector.shape_cast %221 : vector<2xf32> to vector<2x1xf32>
    %223 = arith.addf %213, %222 : vector<2x1xf32>
    %c7_190 = arith.constant 7 : index
    %c0_191 = arith.constant 0 : index
    %c0_192 = arith.constant 0 : index
    %224 = vector.load %arg8[%c7_190, %c0_191, %c0_192] : memref<16x2x32xf32, #tpu.memory_space<vmem>>, vector<1x2x32xf32>
    %225 = vector.shape_cast %224 : vector<1x2x32xf32> to vector<2x32xf32>
    %cst_193 = arith.constant dense<0.000000e+00> : vector<2x16xf32>
    %226 = tpu.matmul %225, %154, %cst_193 {dimension_numbers = #tpu.dot_dimension_numbers<[1], [0], [0], [1], [0, 0, 1, 1], [], []>} : vector<2x32xf32>, vector<32x16xf32>, vector<2x16xf32> -> vector<2x16xf32>
    %c7_194 = arith.constant 7 : index
    %c0_195 = arith.constant 0 : index
    %c0_196 = arith.constant 0 : index
    %227 = vector.load %arg9[%c7_194, %c0_195, %c0_196] : memref<16x1x16xf32, #tpu.memory_space<vmem>>, vector<1x1x16xf32>
    %228 = vector.shape_cast %227 : vector<1x1x16xf32> to vector<1x16xf32>
    %229 = vector.broadcast %228 : vector<1x16xf32> to vector<2x16xf32>
    %230 = arith.mulf %226, %229 : vector<2x16xf32>
    %cst_197 = arith.constant dense<0.000000e+00> : vector<2xf32>
    %231 = vector.multi_reduction <add>, %230, %cst_197 [1] : vector<2x16xf32> to vector<2xf32>
    %232 = vector.shape_cast %231 : vector<2xf32> to vector<2x1xf32>
    %233 = arith.addf %223, %232 : vector<2x1xf32>
    %c8_198 = arith.constant 8 : index
    %c0_199 = arith.constant 0 : index
    %c0_200 = arith.constant 0 : index
    %234 = vector.load %arg8[%c8_198, %c0_199, %c0_200] : memref<16x2x32xf32, #tpu.memory_space<vmem>>, vector<1x2x32xf32>
    %235 = vector.shape_cast %234 : vector<1x2x32xf32> to vector<2x32xf32>
    %cst_201 = arith.constant dense<0.000000e+00> : vector<2x16xf32>
    %236 = tpu.matmul %235, %154, %cst_201 {dimension_numbers = #tpu.dot_dimension_numbers<[1], [0], [0], [1], [0, 0, 1, 1], [], []>} : vector<2x32xf32>, vector<32x16xf32>, vector<2x16xf32> -> vector<2x16xf32>
    %c8_202 = arith.constant 8 : index
    %c0_203 = arith.constant 0 : index
    %c0_204 = arith.constant 0 : index
    %237 = vector.load %arg9[%c8_202, %c0_203, %c0_204] : memref<16x1x16xf32, #tpu.memory_space<vmem>>, vector<1x1x16xf32>
    %238 = vector.shape_cast %237 : vector<1x1x16xf32> to vector<1x16xf32>
    %239 = vector.broadcast %238 : vector<1x16xf32> to vector<2x16xf32>
    %240 = arith.mulf %236, %239 : vector<2x16xf32>
    %cst_205 = arith.constant dense<0.000000e+00> : vector<2xf32>
    %241 = vector.multi_reduction <add>, %240, %cst_205 [1] : vector<2x16xf32> to vector<2xf32>
    %242 = vector.shape_cast %241 : vector<2xf32> to vector<2x1xf32>
    %243 = arith.addf %233, %242 : vector<2x1xf32>
    %c9_206 = arith.constant 9 : index
    %c0_207 = arith.constant 0 : index
    %c0_208 = arith.constant 0 : index
    %244 = vector.load %arg8[%c9_206, %c0_207, %c0_208] : memref<16x2x32xf32, #tpu.memory_space<vmem>>, vector<1x2x32xf32>
    %245 = vector.shape_cast %244 : vector<1x2x32xf32> to vector<2x32xf32>
    %cst_209 = arith.constant dense<0.000000e+00> : vector<2x16xf32>
    %246 = tpu.matmul %245, %154, %cst_209 {dimension_numbers = #tpu.dot_dimension_numbers<[1], [0], [0], [1], [0, 0, 1, 1], [], []>} : vector<2x32xf32>, vector<32x16xf32>, vector<2x16xf32> -> vector<2x16xf32>
    %c9_210 = arith.constant 9 : index
    %c0_211 = arith.constant 0 : index
    %c0_212 = arith.constant 0 : index
    %247 = vector.load %arg9[%c9_210, %c0_211, %c0_212] : memref<16x1x16xf32, #tpu.memory_space<vmem>>, vector<1x1x16xf32>
    %248 = vector.shape_cast %247 : vector<1x1x16xf32> to vector<1x16xf32>
    %249 = vector.broadcast %248 : vector<1x16xf32> to vector<2x16xf32>
    %250 = arith.mulf %246, %249 : vector<2x16xf32>
    %cst_213 = arith.constant dense<0.000000e+00> : vector<2xf32>
    %251 = vector.multi_reduction <add>, %250, %cst_213 [1] : vector<2x16xf32> to vector<2xf32>
    %252 = vector.shape_cast %251 : vector<2xf32> to vector<2x1xf32>
    %253 = arith.addf %243, %252 : vector<2x1xf32>
    %c10_214 = arith.constant 10 : index
    %c0_215 = arith.constant 0 : index
    %c0_216 = arith.constant 0 : index
    %254 = vector.load %arg8[%c10_214, %c0_215, %c0_216] : memref<16x2x32xf32, #tpu.memory_space<vmem>>, vector<1x2x32xf32>
    %255 = vector.shape_cast %254 : vector<1x2x32xf32> to vector<2x32xf32>
    %cst_217 = arith.constant dense<0.000000e+00> : vector<2x16xf32>
    %256 = tpu.matmul %255, %154, %cst_217 {dimension_numbers = #tpu.dot_dimension_numbers<[1], [0], [0], [1], [0, 0, 1, 1], [], []>} : vector<2x32xf32>, vector<32x16xf32>, vector<2x16xf32> -> vector<2x16xf32>
    %c10_218 = arith.constant 10 : index
    %c0_219 = arith.constant 0 : index
    %c0_220 = arith.constant 0 : index
    %257 = vector.load %arg9[%c10_218, %c0_219, %c0_220] : memref<16x1x16xf32, #tpu.memory_space<vmem>>, vector<1x1x16xf32>
    %258 = vector.shape_cast %257 : vector<1x1x16xf32> to vector<1x16xf32>
    %259 = vector.broadcast %258 : vector<1x16xf32> to vector<2x16xf32>
    %260 = arith.mulf %256, %259 : vector<2x16xf32>
    %cst_221 = arith.constant dense<0.000000e+00> : vector<2xf32>
    %261 = vector.multi_reduction <add>, %260, %cst_221 [1] : vector<2x16xf32> to vector<2xf32>
    %262 = vector.shape_cast %261 : vector<2xf32> to vector<2x1xf32>
    %263 = arith.addf %253, %262 : vector<2x1xf32>
    %c11_222 = arith.constant 11 : index
    %c0_223 = arith.constant 0 : index
    %c0_224 = arith.constant 0 : index
    %264 = vector.load %arg8[%c11_222, %c0_223, %c0_224] : memref<16x2x32xf32, #tpu.memory_space<vmem>>, vector<1x2x32xf32>
    %265 = vector.shape_cast %264 : vector<1x2x32xf32> to vector<2x32xf32>
    %cst_225 = arith.constant dense<0.000000e+00> : vector<2x16xf32>
    %266 = tpu.matmul %265, %154, %cst_225 {dimension_numbers = #tpu.dot_dimension_numbers<[1], [0], [0], [1], [0, 0, 1, 1], [], []>} : vector<2x32xf32>, vector<32x16xf32>, vector<2x16xf32> -> vector<2x16xf32>
    %c11_226 = arith.constant 11 : index
    %c0_227 = arith.constant 0 : index
    %c0_228 = arith.constant 0 : index
    %267 = vector.load %arg9[%c11_226, %c0_227, %c0_228] : memref<16x1x16xf32, #tpu.memory_space<vmem>>, vector<1x1x16xf32>
    %268 = vector.shape_cast %267 : vector<1x1x16xf32> to vector<1x16xf32>
    %269 = vector.broadcast %268 : vector<1x16xf32> to vector<2x16xf32>
    %270 = arith.mulf %266, %269 : vector<2x16xf32>
    %cst_229 = arith.constant dense<0.000000e+00> : vector<2xf32>
    %271 = vector.multi_reduction <add>, %270, %cst_229 [1] : vector<2x16xf32> to vector<2xf32>
    %272 = vector.shape_cast %271 : vector<2xf32> to vector<2x1xf32>
    %273 = arith.addf %263, %272 : vector<2x1xf32>
    %c12_230 = arith.constant 12 : index
    %c0_231 = arith.constant 0 : index
    %c0_232 = arith.constant 0 : index
    %274 = vector.load %arg8[%c12_230, %c0_231, %c0_232] : memref<16x2x32xf32, #tpu.memory_space<vmem>>, vector<1x2x32xf32>
    %275 = vector.shape_cast %274 : vector<1x2x32xf32> to vector<2x32xf32>
    %cst_233 = arith.constant dense<0.000000e+00> : vector<2x16xf32>
    %276 = tpu.matmul %275, %154, %cst_233 {dimension_numbers = #tpu.dot_dimension_numbers<[1], [0], [0], [1], [0, 0, 1, 1], [], []>} : vector<2x32xf32>, vector<32x16xf32>, vector<2x16xf32> -> vector<2x16xf32>
    %c12_234 = arith.constant 12 : index
    %c0_235 = arith.constant 0 : index
    %c0_236 = arith.constant 0 : index
    %277 = vector.load %arg9[%c12_234, %c0_235, %c0_236] : memref<16x1x16xf32, #tpu.memory_space<vmem>>, vector<1x1x16xf32>
    %278 = vector.shape_cast %277 : vector<1x1x16xf32> to vector<1x16xf32>
    %279 = vector.broadcast %278 : vector<1x16xf32> to vector<2x16xf32>
    %280 = arith.mulf %276, %279 : vector<2x16xf32>
    %cst_237 = arith.constant dense<0.000000e+00> : vector<2xf32>
    %281 = vector.multi_reduction <add>, %280, %cst_237 [1] : vector<2x16xf32> to vector<2xf32>
    %282 = vector.shape_cast %281 : vector<2xf32> to vector<2x1xf32>
    %283 = arith.addf %273, %282 : vector<2x1xf32>
    %c13_238 = arith.constant 13 : index
    %c0_239 = arith.constant 0 : index
    %c0_240 = arith.constant 0 : index
    %284 = vector.load %arg8[%c13_238, %c0_239, %c0_240] : memref<16x2x32xf32, #tpu.memory_space<vmem>>, vector<1x2x32xf32>
    %285 = vector.shape_cast %284 : vector<1x2x32xf32> to vector<2x32xf32>
    %cst_241 = arith.constant dense<0.000000e+00> : vector<2x16xf32>
    %286 = tpu.matmul %285, %154, %cst_241 {dimension_numbers = #tpu.dot_dimension_numbers<[1], [0], [0], [1], [0, 0, 1, 1], [], []>} : vector<2x32xf32>, vector<32x16xf32>, vector<2x16xf32> -> vector<2x16xf32>
    %c13_242 = arith.constant 13 : index
    %c0_243 = arith.constant 0 : index
    %c0_244 = arith.constant 0 : index
    %287 = vector.load %arg9[%c13_242, %c0_243, %c0_244] : memref<16x1x16xf32, #tpu.memory_space<vmem>>, vector<1x1x16xf32>
    %288 = vector.shape_cast %287 : vector<1x1x16xf32> to vector<1x16xf32>
    %289 = vector.broadcast %288 : vector<1x16xf32> to vector<2x16xf32>
    %290 = arith.mulf %286, %289 : vector<2x16xf32>
    %cst_245 = arith.constant dense<0.000000e+00> : vector<2xf32>
    %291 = vector.multi_reduction <add>, %290, %cst_245 [1] : vector<2x16xf32> to vector<2xf32>
    %292 = vector.shape_cast %291 : vector<2xf32> to vector<2x1xf32>
    %293 = arith.addf %283, %292 : vector<2x1xf32>
    %c14_246 = arith.constant 14 : index
    %c0_247 = arith.constant 0 : index
    %c0_248 = arith.constant 0 : index
    %294 = vector.load %arg8[%c14_246, %c0_247, %c0_248] : memref<16x2x32xf32, #tpu.memory_space<vmem>>, vector<1x2x32xf32>
    %295 = vector.shape_cast %294 : vector<1x2x32xf32> to vector<2x32xf32>
    %cst_249 = arith.constant dense<0.000000e+00> : vector<2x16xf32>
    %296 = tpu.matmul %295, %154, %cst_249 {dimension_numbers = #tpu.dot_dimension_numbers<[1], [0], [0], [1], [0, 0, 1, 1], [], []>} : vector<2x32xf32>, vector<32x16xf32>, vector<2x16xf32> -> vector<2x16xf32>
    %c14_250 = arith.constant 14 : index
    %c0_251 = arith.constant 0 : index
    %c0_252 = arith.constant 0 : index
    %297 = vector.load %arg9[%c14_250, %c0_251, %c0_252] : memref<16x1x16xf32, #tpu.memory_space<vmem>>, vector<1x1x16xf32>
    %298 = vector.shape_cast %297 : vector<1x1x16xf32> to vector<1x16xf32>
    %299 = vector.broadcast %298 : vector<1x16xf32> to vector<2x16xf32>
    %300 = arith.mulf %296, %299 : vector<2x16xf32>
    %cst_253 = arith.constant dense<0.000000e+00> : vector<2xf32>
    %301 = vector.multi_reduction <add>, %300, %cst_253 [1] : vector<2x16xf32> to vector<2xf32>
    %302 = vector.shape_cast %301 : vector<2xf32> to vector<2x1xf32>
    %303 = arith.addf %293, %302 : vector<2x1xf32>
    %c15_254 = arith.constant 15 : index
    %c0_255 = arith.constant 0 : index
    %c0_256 = arith.constant 0 : index
    %304 = vector.load %arg8[%c15_254, %c0_255, %c0_256] : memref<16x2x32xf32, #tpu.memory_space<vmem>>, vector<1x2x32xf32>
    %305 = vector.shape_cast %304 : vector<1x2x32xf32> to vector<2x32xf32>
    %cst_257 = arith.constant dense<0.000000e+00> : vector<2x16xf32>
    %306 = tpu.matmul %305, %154, %cst_257 {dimension_numbers = #tpu.dot_dimension_numbers<[1], [0], [0], [1], [0, 0, 1, 1], [], []>} : vector<2x32xf32>, vector<32x16xf32>, vector<2x16xf32> -> vector<2x16xf32>
    %c15_258 = arith.constant 15 : index
    %c0_259 = arith.constant 0 : index
    %c0_260 = arith.constant 0 : index
    %307 = vector.load %arg9[%c15_258, %c0_259, %c0_260] : memref<16x1x16xf32, #tpu.memory_space<vmem>>, vector<1x1x16xf32>
    %308 = vector.shape_cast %307 : vector<1x1x16xf32> to vector<1x16xf32>
    %309 = vector.broadcast %308 : vector<1x16xf32> to vector<2x16xf32>
    %310 = arith.mulf %306, %309 : vector<2x16xf32>
    %cst_261 = arith.constant dense<0.000000e+00> : vector<2xf32>
    %311 = vector.multi_reduction <add>, %310, %cst_261 [1] : vector<2x16xf32> to vector<2xf32>
    %312 = vector.shape_cast %311 : vector<2xf32> to vector<2x1xf32>
    %313 = arith.addf %303, %312 : vector<2x1xf32>
    %c0_262 = arith.constant 0 : index
    %c0_263 = arith.constant 0 : index
    %314 = vector.load %arg10[%c0_262, %c0_263] : memref<1x1xf32, #tpu.memory_space<vmem>>, vector<1x1xf32>
    %315 = vector.broadcast %314 : vector<1x1xf32> to vector<2x1xf32>
    %316 = arith.addf %313, %315 : vector<2x1xf32>
    %c0_264 = arith.constant 0 : index
    %c0_265 = arith.constant 0 : index
    %317 = vector.load %arg11[%c0_264, %c0_265] : memref<2x1xf32, #tpu.memory_space<vmem>>, vector<2x1xf32>
    tpu.vector_store %arg11[%c0_264, %c0_265], %316 {strides = array<i32>} : memref<2x1xf32, #tpu.memory_space<vmem>>, vector<2x1xf32>,
    return
  }
}

</mosaic_0001>

<bundles_post_ra>
// kernel: _lambda_.1
= control target key start
LH: loop header
LB: loop body
LE: loop exit
PB: predicated region body
PF: predicated region fallthrough
CT: control target
= control target key end

     0   :  { %vm69_vm0 = vcmask 392192   ;;  %s8264_s1 = inlined_call_operand.vmem [shape: f32[48,8], index: 1, kind: input, shape index: {}]   ;;  %s8265_s0 = inlined_call_operand.vmem [shape: f32[128,48], index: 0, kind: input, shape index: {}]   ;;  %s8266_s3 = inlined_call_operand.vmem [shape: f32[16,32,128], index: 3, kind: input, shape index: {}]   ;;  %s8267_s2 = inlined_call_operand.vmem [shape: f32[1,8], index: 2, kind: input, shape index: {}]   ;;  %s8268_s4 = inlined_call_operand.vmem [shape: f32[16,8,16], index: 4, kind: input, shape index: {}]   ;;  %s8269_s5 = inlined_call_operand.vmem [shape: f32[1,16], index: 5, kind: input, shape index: {}]   ;;  %s8270_s6 = inlined_call_operand.vmem [shape: f32[1,16], index: 6, kind: input, shape index: {}]   ;;  %s8271_s7 = inlined_call_operand.vmem [shape: f32[1,16], index: 7, kind: input, shape index: {}]   ;;  %s8272_s8 = inlined_call_operand.vmem [shape: f32[16,2,32], index: 8, kind: input, shape index: {}]   ;;  %s8273_s9 = inlined_call_operand.vmem [shape: f32[16,1,16], index: 9, kind: input, shape index: {}]   ;;  %s8274_s10 = inlined_call_operand.<no memory space> [shape: f32[1,1], index: 10, kind: input, shape index: {}]   ;;  %s8275_s11 = inlined_call_operand.vmem [shape: f32[2,1], index: 11, kind: output, shape index: {}]  }
   0x1   :  { %v56_v0 = vld [vmem:[%s8264_s1] sm:$0xff]  ;;  %v57_v1 = vld [vmem:[%s8264_s1 + $0x8] sm:$0xff]  ;;  %v58_v2 = vld [vmem:[%s8264_s1 + $0x10] sm:$0xff] }
   0x2   :  { %v6567_v3 = vpack.c.bf16 %v57_v1, %v56_v0  ;;  %v59_v4 = vld [vmem:[%s8264_s1 + $0x18] sm:$0xff]  ;;  %v60_v6 = vld [vmem:[%s8264_s1 + $0x20] sm:$0xff]  ;;  %v61_v7 = vld [vmem:[%s8264_s1 + $0x28] sm:$0xff] }
   0x3   :  { %v6571_v5 = vpack.c.bf16 %v59_v4, %v58_v2  ;;  %v40_v8 = vld [vmem:[%s8265_s0] sm:$0xff]  ;;  %v6575_v9 = vpack.c.bf16 %v61_v7, %v60_v6  ;;  %v41_v10 = vld [vmem:[%s8265_s0 + $0x8] sm:$0xff]  ;;  %v42_v11 = vld [vmem:[%s8265_s0 + $0x10] sm:$0xff] }
   0x4   :  { %6568 = vmatprep.subr.bf16.mxu0 %v6567_v3  ;;  %5631 = vmatprep.mubr.msk.f32.mxu0 %vm69_vm0, %v40_v8  ;;  %v43_v12 = vld [vmem:[%s8265_s0 + $0x18] sm:$0xff]  ;;  %v44_v13 = vld [vmem:[%s8265_s0 + $0x20] sm:$0xff]  ;;  %v45_v14 = vld [vmem:[%s8265_s0 + $0x28] sm:$0xff] }
   0x5   :  { %6570 = vmatpush3.bf16.msra.mxu0 %v6567_v3  ;;  %v46_v15 = vld [vmem:[%s8265_s0 + $0x30] sm:$0xff]  ;;  %v47_v16 = vld [vmem:[%s8265_s0 + $0x38] sm:$0xff]  ;;  %v48_v17 = vld [vmem:[%s8265_s0 + $0x40] sm:$0xff] }
   0x6   :  { %6572 = vmatprep.subr.bf16.mxu0 %v6571_v5  ;;  %v49_v18 = vld [vmem:[%s8265_s0 + $0x48] sm:$0xff]  ;;  %v50_v19 = vld [vmem:[%s8265_s0 + $0x50] sm:$0xff]  ;;  %v51_v20 = vld [vmem:[%s8265_s0 + $0x58] sm:$0xff] }
   0x7   :  { %v52_v21 = vld [vmem:[%s8265_s0 + $0x60] sm:$0xff]  ;;  %v53_v22 = vld [vmem:[%s8265_s0 + $0x68] sm:$0xff]  ;;  %v54_v23 = vld [vmem:[%s8265_s0 + $0x70] sm:$0xff] }
   0x8   :  { %v55_v24 = vld [vmem:[%s8265_s0 + $0x78] sm:$0xff]  ;;  %v4914_v25 = vld [vmem:[%s8266_s3 + $0x20] sm:$0xff] }
   0x9   :  { %6574 = vmatpush3.bf16.msra.mxu0 %v6571_v5  ;;  %v311_v26 = vld [vmem:[%s8266_s3] sm:$0xff] }
   0xa   :  { %6576 = vmatprep.subr.bf16.mxu0 %v6575_v9  ;;  %5687 = vmatprep.mubr.f32.mxu1 %v311_v26  ;;  %v7406_v27 = vld [vmem:[%s8267_s2] ss:$0 sm:$0xff] }
   0xd   :  { %6578 = vmatpush3.bf16.msra.mxu0 %v6575_v9 }
  0x10   :  { %5632 = vmatmul.mubr.msk.f32.vlgmr.msra.gmra.mrb[0].mxu0 %vm69_vm0, %v41_v10 }
  0x11   :  { %5634 = vmatprep.mubr.msk.f32.mxu0 %vm69_vm0, %v42_v11 }
  0x14   :  { %5635 = vmatmul.mubr.msk.f32.gmra.mrb[2].mxu0 %vm69_vm0, %v43_v12 }
  0x15   :  { %5637 = vmatprep.mubr.msk.f32.mxu0 %vm69_vm0, %v44_v13 }
  0x18   :  { %5638 = vmatmul.mubr.msk.f32.gmra.mrb[4].mxu0 %vm69_vm0, %v45_v14 }
  0x19   :  { %5640 = vmatprep.mubr.msk.f32.mxu0 %vm69_vm0, %v46_v15 }
  0x1c   :  { %5641 = vmatmul.mubr.msk.f32.gmra.mrb[6].mxu0 %vm69_vm0, %v47_v16 }
  0x1d   :  { %5643 = vmatprep.mubr.msk.f32.mxu0 %vm69_vm0, %v48_v17 }
  0x20   :  { %5644 = vmatmul.mubr.msk.f32.gmra.mrb[8].mxu0 %vm69_vm0, %v49_v18 }
  0x21   :  { %5646 = vmatprep.mubr.msk.f32.mxu0 %vm69_vm0, %v50_v19 }
  0x24   :  { %5647 = vmatmul.mubr.msk.f32.gmra.mrb[10].mxu0 %vm69_vm0, %v51_v20 }
  0x25   :  { %5649 = vmatprep.mubr.msk.f32.mxu0 %vm69_vm0, %v52_v21 }
  0x28   :  { %5650 = vmatmul.mubr.msk.f32.gmra.mrb[12].mxu0 %vm69_vm0, %v53_v22 }
  0x29   :  { %5652 = vmatprep.mubr.msk.f32.mxu0 %vm69_vm0, %v54_v23 }
  0x2c   :  { %5653 = vmatmul.mubr.msk.f32.gmra.mrb[14].mxu0 %vm69_vm0, %v55_v24 }
  0x2d   :  { %5725 = vmatprep.mubr.f32.mxu0 %v4914_v25 }
  0xe3   :  { %v5633_v28 = vpop.f32.mrb[0].mxu0 }
  0xe4   :  { %v190_v29 = vadd.f32 %v5633_v28, %v7406_v27  ;;  %v184_v30 = vpop.f32.mrb[1].mxu0 }
  0xe5   :  { %v185_v31 = vadd.f32 %v7406_v27, %v184_v30 }
  0xe6   :  { %vm264_vm1 = vcmp.ge.f32.partialorder %v190_v29, 0.0  ;;  %v280_v32 = vmul.f32 0.2, %v190_v29 }
  0xe7   :  { %vm263_vm2 = vcmp.ge.f32.partialorder %v185_v31, 0.0  ;;  %v279_v33 = vmul.f32 0.2, %v185_v31  ;;  %v5636_v34 = vpop.f32.mrb[2].mxu0 }
  0xe8   :  { %v296_v35 = vsel %vm264_vm1, %v190_v29, %v280_v32  ;;  %v200_v36 = vadd.f32 %v5636_v34, %v7406_v27  ;;  %v194_v37 = vpop.f32.mrb[3].mxu0  ;;  %vm493_vm1 = vcmask 64512  }
  0xe9   :  { %v295_v38 = vsel %vm263_vm2, %v185_v31, %v279_v33  ;;  %v195_v39 = vadd.f32 %v7406_v27, %v194_v37  ;;  %v312_v37 = vld [vmem:[%s8266_s3 + $0x8] sm:$0xff]  ;;  %vm7253_vm2 = vmmov 0  }
  0xea   :  { %v7412_v40 = vpack.c.bf16 %v296_v35, %v295_v38  ;;  %vm266_vm3 = vcmp.ge.f32.partialorder %v200_v36, 0.0  ;;  %v282_v41 = vmul.f32 0.2, %v200_v36  ;;  %v4916_v38 = vld [vmem:[%s8266_s3 + $0x30] sm:$0xff] }
  0xeb   :  { %vm265_vm4 = vcmp.ge.f32.partialorder %v195_v39, 0.0  ;;  %v281_v42 = vmul.f32 0.2, %v195_v39  ;;  %v5639_v43 = vpop.f32.mrb[4].mxu0 }
  0xec   :  { %v298_v44 = vsel %vm266_vm3, %v200_v36, %v282_v41  ;;  %v210_v45 = vadd.f32 %v5639_v43, %v7406_v27  ;;  %v204_v46 = vpop.f32.mrb[5].mxu0  ;;  %6580 = vmatprep.subr.bf16.mxu1 %v7412_v40  ;;  %6612 = vmatprep.subr.bf16.mxu0 %v7412_v40  ;;  %v4915_v36 = vld [vmem:[%s8266_s3 + $0x28] sm:$0xff]  ;;  %v4917_v41 = vld [vmem:[%s8266_s3 + $0x38] sm:$0xff]  ;;  %v4927_v43 = vld [vmem:[%s8266_s3 + $0x40] sm:$0xff]  ;;  %vm3401_vm3 = vcmask 130048  }
  0xed   :  { %v297_v47 = vsel %vm265_vm4, %v195_v39, %v281_v42  ;;  %v205_v48 = vadd.f32 %v7406_v27, %v204_v46  ;;  %6582 = vmatpush3.bf16.msra.mxu1 %v7412_v40  ;;  %6614 = vmatpush3.bf16.msra.mxu0 %v7412_v40  ;;  %v313_v39 = vld [vmem:[%s8266_s3 + $0x10] sm:$0xff]  ;;  %v314_v42 = vld [vmem:[%s8266_s3 + $0x18] sm:$0xff] }
  0xee   :  { %v7420_v49 = vpack.c.bf16 %v298_v44, %v297_v47  ;;  %vm268_vm5 = vcmp.ge.f32.partialorder %v210_v45, 0.0  ;;  %v284_v50 = vmul.f32 0.2, %v210_v45  ;;  %v4928_v44 = vld [vmem:[%s8266_s3 + $0x48] sm:$0xff]  ;;  %v4930_v46 = vld [vmem:[%s8266_s3 + $0x58] sm:$0xff]  ;;  %v4945_v47 = vld [vmem:[%s8266_s3 + $0x80] sm:$0xff] }
  0xef   :  { %vm267_vm6 = vcmp.ge.f32.partialorder %v205_v48, 0.0  ;;  %v283_v51 = vmul.f32 0.2, %v205_v48  ;;  %v5642_v52 = vpop.f32.mrb[6].mxu0 }
  0xf0   :  { %v300_v53 = vsel %vm268_vm5, %v210_v45, %v284_v50  ;;  %v220_v54 = vadd.f32 %v5642_v52, %v7406_v27  ;;  %v214_v55 = vpop.f32.mrb[7].mxu0  ;;  %6584 = vmatprep.subr.bf16.mxu1 %v7420_v49  ;;  %6616 = vmatprep.subr.bf16.mxu0 %v7420_v49  ;;  %v4929_v45 = vld [vmem:[%s8266_s3 + $0x50] sm:$0xff]  ;;  %v4963_v52 = vld [vmem:[%s8266_s3 + $0xc0] sm:$0xff] }
  0xf1   :  { %v299_v56 = vsel %vm267_vm6, %v205_v48, %v283_v51  ;;  %v215_v57 = vadd.f32 %v7406_v27, %v214_v55  ;;  %6586 = vmatpush3.bf16.msra.mxu1 %v7420_v49  ;;  %6618 = vmatpush3.bf16.msra.mxu0 %v7420_v49  ;;  %v4946_v48 = vld [vmem:[%s8266_s3 + $0x88] sm:$0xff]  ;;  %v4947_v50 = vld [vmem:[%s8266_s3 + $0x90] sm:$0xff]  ;;  %v4948_v51 = vld [vmem:[%s8266_s3 + $0x98] sm:$0xff] }
  0xf2   :  { %v7428_v58 = vpack.c.bf16 %v300_v53, %v299_v56  ;;  %vm270_vm7 = vcmp.ge.f32.partialorder %v220_v54, 0.0  ;;  %v286_v59 = vmul.f32 0.2, %v220_v54  ;;  %v4918_v53 = vld [vmem:[%s8268_s4 + $0x8] sm:$0xff]  ;;  %v4965_v56 = vld [vmem:[%s8266_s3 + $0xd0] sm:$0xff] }
  0xf3   :  { %vm269_vm8 = vcmp.ge.f32.partialorder %v215_v57, 0.0  ;;  %v285_v60 = vmul.f32 0.2, %v215_v57  ;;  %v5645_v61 = vpop.f32.mrb[8].mxu0  ;;  %v4964_v55 = vld [vmem:[%s8266_s3 + $0xc8] sm:$0xff] }
  0xf4   :  { %v302_v62 = vsel %vm270_vm7, %v220_v54, %v286_v59  ;;  %v230_v63 = vadd.f32 %v5645_v61, %v7406_v27  ;;  %v224_v0 = vpop.f32.mrb[9].mxu0  ;;  %6588 = vmatprep.subr.bf16.mxu1 %v7428_v58  ;;  %6620 = vmatprep.subr.bf16.mxu0 %v7428_v58  ;;  %v7570_v54 = vld [vmem:[%s8268_s4] sm:$0xff]  ;;  %v4974_v61 = vld [vmem:[%s8266_s3 + $0xf0] sm:$0xff] }
  0xf5   :  { %v301_v1 = vsel %vm269_vm8, %v215_v57, %v285_v60  ;;  %v225_v2 = vadd.f32 %v7406_v27, %v224_v0  ;;  %6590 = vmatpush3.bf16.msra.mxu1 %v7428_v58  ;;  %6622 = vmatpush3.bf16.msra.mxu0 %v7428_v58  ;;  %v4966_v57 = vld [vmem:[%s8266_s3 + $0xd8] sm:$0xff]  ;;  %v4972_v59 = vld [vmem:[%s8266_s3 + $0xe0] sm:$0xff]  ;;  %v4973_v60 = vld [vmem:[%s8266_s3 + $0xe8] sm:$0xff]  ;;  %vm3477_vm8 = vcmask 261120  }
  0xf6   :  { %v7436_v3 = vpack.c.bf16 %v302_v62, %v301_v1  ;;  %vm272_vm9 = vcmp.ge.f32.partialorder %v230_v63, 0.0  ;;  %v288_v4 = vmul.f32 0.2, %v230_v63  ;;  %v4975_v62 = vld [vmem:[%s8266_s3 + $0xf8] sm:$0xff]  ;;  %v4991_v0 = vld [vmem:[%s8266_s3 + $0x128] sm:$0xff]  ;;  %v4992_v1 = vld [vmem:[%s8266_s3 + $0x130] sm:$0xff] }
  0xf7   :  { %vm271_vm10 = vcmp.ge.f32.partialorder %v225_v2, 0.0  ;;  %v287_v5 = vmul.f32 0.2, %v225_v2  ;;  %v5648_v6 = vpop.f32.mrb[10].mxu0 }
  0xf8   :  { %v304_v7 = vsel %vm272_vm9, %v230_v63, %v288_v4  ;;  %v240_v8 = vadd.f32 %v5648_v6, %v7406_v27  ;;  %v234_v9 = vpop.f32.mrb[11].mxu0  ;;  %6592 = vmatprep.subr.bf16.mxu1 %v7436_v3  ;;  %6624 = vmatprep.subr.bf16.mxu0 %v7436_v3  ;;  %v4990_v63 = vld [vmem:[%s8266_s3 + $0x120] sm:$0xff]  ;;  %v5001_v6 = vld [vmem:[%s8266_s3 + $0x150] sm:$0xff]  ;;  %vm3559_vm9 = vcmask 123904  }
  0xf9   :  { %v303_v10 = vsel %vm271_vm10, %v225_v2, %v287_v5  ;;  %v235_v11 = vadd.f32 %v7406_v27, %v234_v9  ;;  %6594 = vmatpush3.bf16.msra.mxu1 %v7436_v3  ;;  %6626 = vmatpush3.bf16.msra.mxu0 %v7436_v3  ;;  %v4993_v2 = vld [vmem:[%s8266_s3 + $0x138] sm:$0xff]  ;;  %v4999_v4 = vld [vmem:[%s8266_s3 + $0x140] sm:$0xff]  ;;  %v5000_v5 = vld [vmem:[%s8266_s3 + $0x148] sm:$0xff]  ;;  %vm4891_vm10 = vcmask 1024  }
  0xfa   :  { %v7444_v12 = vpack.c.bf16 %v304_v7, %v303_v10  ;;  %vm274_vm11 = vcmp.ge.f32.partialorder %v240_v8, 0.0  ;;  %v290_v13 = vmul.f32 0.2, %v240_v8  ;;  %v5002_v7 = vld [vmem:[%s8266_s3 + $0x158] sm:$0xff] }
  0xfb   :  { %vm273_vm12 = vcmp.ge.f32.partialorder %v235_v11, 0.0  ;;  %v289_v14 = vmul.f32 0.2, %v235_v11  ;;  %v5651_v15 = vpop.f32.mrb[12].mxu0 }
  0xfc   :  { %v306_v16 = vsel %vm274_vm11, %v240_v8, %v290_v13  ;;  %v250_v17 = vadd.f32 %v5651_v15, %v7406_v27  ;;  %v244_v18 = vpop.f32.mrb[13].mxu0  ;;  %6596 = vmatprep.subr.bf16.mxu1 %v7444_v12  ;;  %6628 = vmatprep.subr.bf16.mxu0 %v7444_v12  ;;  %v5017_v8 = vld [vmem:[%s8266_s3 + $0x180] sm:$0xff] }
  0xfd   :  { %v305_v19 = vsel %vm273_vm12, %v235_v11, %v289_v14  ;;  %v245_v20 = vadd.f32 %v7406_v27, %v244_v18  ;;  %6598 = vmatpush3.bf16.msra.mxu1 %v7444_v12  ;;  %6630 = vmatpush3.bf16.msra.mxu0 %v7444_v12  ;;  %v4931_v14 = vld [vmem:[%s8268_s4 + $0x10] sm:$0xff] }
  0xfe   :  { %v7452_v21 = vpack.c.bf16 %v306_v16, %v305_v19  ;;  %vm276_vm13 = vcmp.ge.f32.partialorder %v250_v17, 0.0  ;;  %v292_v22 = vmul.f32 0.2, %v250_v17  ;;  %v5018_v19 = vld [vmem:[%s8266_s3 + $0x188] sm:$0xff] }
  0xff   :  { %vm275_vm14 = vcmp.ge.f32.partialorder %v245_v20, 0.0  ;;  %v291_v23 = vmul.f32 0.2, %v245_v20  ;;  %v5654_v24 = vpop.f32.mrb[14].mxu0 }
 0x100   :  { %v308_v25 = vsel %vm276_vm13, %v250_v17, %v292_v22  ;;  %v260_v26 = vadd.f32 %v5654_v24, %v7406_v27  ;;  %v254_v28 = vpop.f32.mrb[15].mxu0  ;;  %6600 = vmatprep.subr.bf16.mxu1 %v7452_v21  ;;  %6632 = vmatprep.subr.bf16.mxu0 %v7452_v21  ;;  %v5020_v22 = vld [vmem:[%s8266_s3 + $0x198] sm:$0xff] }
 0x101   :  { %v307_v29 = vsel %vm275_vm14, %v245_v20, %v291_v23  ;;  %v255_v30 = vadd.f32 %v7406_v27, %v254_v28  ;;  %6602 = vmatpush3.bf16.msra.mxu1 %v7452_v21  ;;  %6634 = vmatpush3.bf16.msra.mxu0 %v7452_v21  ;;  %v5019_v20 = vld [vmem:[%s8266_s3 + $0x190] sm:$0xff]  ;;  %v5035_v23 = vld [vmem:[%s8266_s3 + $0x1c0] sm:$0xff] }
 0x102   :  { %v7460_v31 = vpack.c.bf16 %v308_v25, %v307_v29  ;;  %vm278_vm15 = vcmp.ge.f32.partialorder %v260_v26, 0.0  ;;  %v294_v32 = vmul.f32 0.2, %v260_v26  ;;  %v4936_v29 = vld [vmem:[%s8266_s3 + $0x60] sm:$0xff] }
 0x103   :  { %vm277_vm0 = vcmp.ge.f32.partialorder %v255_v30, 0.0  ;;  %v293_v33 = vmul.f32 0.2, %v255_v30 }
 0x104   :  { %v310_v34 = vsel %vm278_vm15, %v260_v26, %v294_v32  ;;  %6604 = vmatprep.subr.bf16.mxu1 %v7460_v31  ;;  %6636 = vmatprep.subr.bf16.mxu0 %v7460_v31  ;;  %v4940_v32 = vld [vmem:[%s8268_s4 + $0x18] sm:$0xff] }
 0x105   :  { %v309_v35 = vsel %vm277_vm0, %v255_v30, %v293_v33  ;;  %6606 = vmatpush3.bf16.msra.mxu1 %v7460_v31  ;;  %6638 = vmatpush3.bf16.msra.mxu0 %v7460_v31  ;;  %v5036_v30 = vld [vmem:[%s8266_s3 + $0x1c8] sm:$0xff] }
 0x106   :  { %v7466_v27 = vpack.c.bf16 %v310_v34, %v309_v35  ;;  %v4937_v33 = vld [vmem:[%s8266_s3 + $0x68] sm:$0xff]  ;;  %v4938_v34 = vld [vmem:[%s8266_s3 + $0x70] sm:$0xff]  ;;  %v4939_v35 = vld [vmem:[%s8266_s3 + $0x78] sm:$0xff] }
 0x108   :  { %6608 = vmatprep.subr.bf16.mxu1 %v7466_v27  ;;  %6640 = vmatprep.subr.bf16.mxu0 %v7466_v27 }
 0x109   :  { %6610 = vmatpush3.bf16.msra.mxu1 %v7466_v27  ;;  %6642 = vmatpush3.bf16.msra.mxu0 %v7466_v27 }
 0x10a   :  { %6644 = vmatprep.subr.bf16.mxu0 %v7412_v40  ;;  %5731 = vmatprep.subr.mxu1 %v4918_v53 }
 0x10c   :  { %5726 = vmatmul.mubr.f32.vlgmr.msra.gmra.mrb[16].mxu0 %v4915_v36  ;;  %5688 = vmatmul.mubr.f32.vlgmr.msra.gmra.mrb[0].mxu1 %v312_v37  ;;  %v4949_v36 = vld [vmem:[%s8268_s4 + $0x20] sm:$0xff] }
 0x10d   :  { %6646 = vmatpush3.bf16.msra.mxu0 %v7412_v40  ;;  %5728 = vmatprep.mubr.f32.mxu0 %v4916_v38 }
 0x10e   :  { %6648 = vmatprep.subr.bf16.mxu0 %v7420_v49  ;;  %5690 = vmatprep.mubr.f32.mxu1 %v313_v39 }
 0x10f   :  { %5732 = vmatpush3.msra.mxu1 %v4918_v53  ;;  %v4957_v53 = vld [vmem:[%s8266_s3 + $0xb8] sm:$0xff] }
 0x110   :  { %5729 = vmatmul.mubr.f32.gmra.mrb[18].mxu0 %v4917_v41  ;;  %5691 = vmatmul.mubr.f32.gmra.mrb[2].mxu1 %v314_v42 }
 0x111   :  { %6650 = vmatpush3.bf16.msra.mxu0 %v7420_v49  ;;  %5779 = vmatprep.mubr.f32.mxu0 %v4927_v43 }
 0x112   :  { %6652 = vmatprep.subr.bf16.mxu0 %v7428_v58  ;;  %5739 = vmatprep.subr.mxu1 %v7570_v54 }
 0x115   :  { %6654 = vmatpush3.bf16.msra.mxu0 %v7428_v58 }
 0x116   :  { %6656 = vmatprep.subr.bf16.mxu0 %v7436_v3 }
 0x119   :  { %6658 = vmatpush3.bf16.msra.mxu0 %v7436_v3 }
 0x11a   :  { %6660 = vmatprep.subr.bf16.mxu0 %v7444_v12 }
 0x11d   :  { %6662 = vmatpush3.bf16.msra.mxu0 %v7444_v12 }
 0x11e   :  { %6664 = vmatprep.subr.bf16.mxu0 %v7452_v21 }
 0x121   :  { %6666 = vmatpush3.bf16.msra.mxu0 %v7452_v21 }
 0x122   :  { %6668 = vmatprep.subr.bf16.mxu0 %v7460_v31 }
 0x125   :  { %6670 = vmatpush3.bf16.msra.mxu0 %v7460_v31 }
 0x126   :  { %6672 = vmatprep.subr.bf16.mxu0 %v7466_v27 }
 0x129   :  { %6674 = vmatpush3.bf16.msra.mxu0 %v7466_v27 }
 0x12a   :  { %6708 = vmatprep.subr.bf16.mxu0 %v7412_v40 }
 0x12c   :  { %5780 = vmatmul.mubr.f32.vlgmr.msra.gmra.mrb[20].mxu0 %v4928_v44 }
 0x12d   :  { %6710 = vmatpush3.bf16.msra.mxu0 %v7412_v40  ;;  %5782 = vmatprep.mubr.f32.mxu0 %v4929_v45 }
 0x12e   :  { %6712 = vmatprep.subr.bf16.mxu0 %v7420_v49 }
 0x130   :  { %5783 = vmatmul.mubr.f32.gmra.mrb[22].mxu0 %v4930_v46 }
 0x131   :  { %6714 = vmatpush3.bf16.msra.mxu0 %v7420_v49  ;;  %5871 = vmatprep.mubr.f32.mxu0 %v4945_v47 }
 0x132   :  { %6716 = vmatprep.subr.bf16.mxu0 %v7428_v58 }
 0x135   :  { %6718 = vmatpush3.bf16.msra.mxu0 %v7428_v58 }
 0x136   :  { %6720 = vmatprep.subr.bf16.mxu0 %v7436_v3 }
 0x139   :  { %6722 = vmatpush3.bf16.msra.mxu0 %v7436_v3 }
 0x13a   :  { %6724 = vmatprep.subr.bf16.mxu0 %v7444_v12 }
 0x13d   :  { %6726 = vmatpush3.bf16.msra.mxu0 %v7444_v12 }
 0x13e   :  { %6728 = vmatprep.subr.bf16.mxu0 %v7452_v21 }
 0x141   :  { %6730 = vmatpush3.bf16.msra.mxu0 %v7452_v21 }
 0x142   :  { %6732 = vmatprep.subr.bf16.mxu0 %v7460_v31 }
 0x145   :  { %6734 = vmatpush3.bf16.msra.mxu0 %v7460_v31 }
 0x146   :  { %6736 = vmatprep.subr.bf16.mxu0 %v7466_v27 }
 0x149   :  { %6738 = vmatpush3.bf16.msra.mxu0 %v7466_v27 }
 0x14a   :  { %6772 = vmatprep.subr.bf16.mxu0 %v7412_v40 }
 0x14c   :  { %5872 = vmatmul.mubr.f32.vlgmr.msra.gmra.mrb[24].mxu0 %v4946_v48  ;;  %v4954_v48 = vld [vmem:[%s8266_s3 + $0xa0] sm:$0xff] }
 0x14d   :  { %6774 = vmatpush3.bf16.msra.mxu0 %v7412_v40  ;;  %5874 = vmatprep.mubr.f32.mxu0 %v4947_v50  ;;  %v4958_v50 = vld [vmem:[%s8268_s4 + $0x28] sm:$0xff] }
 0x14e   :  { %6776 = vmatprep.subr.bf16.mxu0 %v7420_v49 }
 0x150   :  { %5875 = vmatmul.mubr.f32.gmra.mrb[26].mxu0 %v4948_v51  ;;  %v4955_v51 = vld [vmem:[%s8266_s3 + $0xa8] sm:$0xff] }
 0x151   :  { %6778 = vmatpush3.bf16.msra.mxu0 %v7420_v49  ;;  %5963 = vmatprep.mubr.f32.mxu0 %v4963_v52  ;;  %v4956_v52 = vld [vmem:[%s8266_s3 + $0xb0] sm:$0xff] }
 0x152   :  { %6780 = vmatprep.subr.bf16.mxu0 %v7428_v58 }
 0x155   :  { %6782 = vmatpush3.bf16.msra.mxu0 %v7428_v58 }
 0x156   :  { %6784 = vmatprep.subr.bf16.mxu0 %v7436_v3 }
 0x159   :  { %6786 = vmatpush3.bf16.msra.mxu0 %v7436_v3 }
 0x15a   :  { %6788 = vmatprep.subr.bf16.mxu0 %v7444_v12 }
 0x15d   :  { %6790 = vmatpush3.bf16.msra.mxu0 %v7444_v12 }
 0x15e   :  { %6792 = vmatprep.subr.bf16.mxu0 %v7452_v21 }
 0x161   :  { %6794 = vmatpush3.bf16.msra.mxu0 %v7452_v21 }
 0x162   :  { %6796 = vmatprep.subr.bf16.mxu0 %v7460_v31 }
 0x165   :  { %6798 = vmatpush3.bf16.msra.mxu0 %v7460_v31 }
 0x166   :  { %6800 = vmatprep.subr.bf16.mxu0 %v7466_v27 }
 0x169   :  { %6802 = vmatpush3.bf16.msra.mxu0 %v7466_v27 }
 0x16a   :  { %6804 = vmatprep.subr.bf16.mxu0 %v7412_v40 }
 0x16c   :  { %5964 = vmatmul.mubr.f32.vlgmr.msra.gmra.mrb[28].mxu0 %v4964_v55 }
 0x16d   :  { %6806 = vmatpush3.bf16.msra.mxu0 %v7412_v40  ;;  %5966 = vmatprep.mubr.f32.mxu0 %v4965_v56 }
 0x16e   :  { %6808 = vmatprep.subr.bf16.mxu0 %v7420_v49 }
 0x170   :  { %5967 = vmatmul.mubr.f32.gmra.mrb[30].mxu0 %v4966_v57 }
 0x171   :  { %6810 = vmatpush3.bf16.msra.mxu0 %v7420_v49  ;;  %6009 = vmatprep.mubr.f32.mxu0 %v4972_v59 }
 0x172   :  { %6812 = vmatprep.subr.bf16.mxu0 %v7428_v58 }
 0x175   :  { %6814 = vmatpush3.bf16.msra.mxu0 %v7428_v58 }
 0x176   :  { %6816 = vmatprep.subr.bf16.mxu0 %v7436_v3 }
 0x179   :  { %6818 = vmatpush3.bf16.msra.mxu0 %v7436_v3 }
 0x17a   :  { %6820 = vmatprep.subr.bf16.mxu0 %v7444_v12 }
 0x17d   :  { %6822 = vmatpush3.bf16.msra.mxu0 %v7444_v12 }
 0x17e   :  { %6824 = vmatprep.subr.bf16.mxu0 %v7452_v21 }
 0x181   :  { %6826 = vmatpush3.bf16.msra.mxu0 %v7452_v21 }
 0x182   :  { %6828 = vmatprep.subr.bf16.mxu0 %v7460_v31 }
 0x185   :  { %6830 = vmatpush3.bf16.msra.mxu0 %v7460_v31 }
 0x186   :  { %6832 = vmatprep.subr.bf16.mxu0 %v7466_v27 }
 0x189   :  { %6834 = vmatpush3.bf16.msra.mxu0 %v7466_v27 }
 0x18a   :  { %6868 = vmatprep.subr.bf16.mxu0 %v7412_v40 }
 0x18c   :  { %6010 = vmatmul.mubr.f32.vlgmr.msra.gmra.mrb[32].mxu0 %v4973_v60 }
 0x18d   :  { %6870 = vmatpush3.bf16.msra.mxu0 %v7412_v40  ;;  %6012 = vmatprep.mubr.f32.mxu0 %v4974_v61 }
 0x18e   :  { %6872 = vmatprep.subr.bf16.mxu0 %v7420_v49 }
 0x190   :  { %6013 = vmatmul.mubr.f32.gmra.mrb[34].mxu0 %v4975_v62 }
 0x191   :  { %6874 = vmatpush3.bf16.msra.mxu0 %v7420_v49  ;;  %6101 = vmatprep.mubr.f32.mxu0 %v4990_v63 }
 0x192   :  { %6876 = vmatprep.subr.bf16.mxu0 %v7428_v58 }
 0x195   :  { %6878 = vmatpush3.bf16.msra.mxu0 %v7428_v58 }
 0x196   :  { %6880 = vmatprep.subr.bf16.mxu0 %v7436_v3 }
 0x199   :  { %6882 = vmatpush3.bf16.msra.mxu0 %v7436_v3 }
 0x19a   :  { %6884 = vmatprep.subr.bf16.mxu0 %v7444_v12 }
 0x19d   :  { %6886 = vmatpush3.bf16.msra.mxu0 %v7444_v12 }
 0x19e   :  { %6888 = vmatprep.subr.bf16.mxu0 %v7452_v21 }
 0x1a1   :  { %6890 = vmatpush3.bf16.msra.mxu0 %v7452_v21 }
 0x1a2   :  { %6892 = vmatprep.subr.bf16.mxu0 %v7460_v31 }
 0x1a5   :  { %6894 = vmatpush3.bf16.msra.mxu0 %v7460_v31 }
 0x1a6   :  { %6896 = vmatprep.subr.bf16.mxu0 %v7466_v27 }
 0x1a9   :  { %6898 = vmatpush3.bf16.msra.mxu0 %v7466_v27 }
 0x1aa   :  { %6900 = vmatprep.subr.bf16.mxu0 %v7412_v40 }
 0x1ac   :  { %6102 = vmatmul.mubr.f32.vlgmr.msra.gmra.mrb[36].mxu0 %v4991_v0 }
 0x1ad   :  { %6902 = vmatpush3.bf16.msra.mxu0 %v7412_v40  ;;  %6104 = vmatprep.mubr.f32.mxu0 %v4992_v1 }
 0x1ae   :  { %6904 = vmatprep.subr.bf16.mxu0 %v7420_v49 }
 0x1b0   :  { %6105 = vmatmul.mubr.f32.gmra.mrb[38].mxu0 %v4993_v2  ;;  %v4976_v2 = vld [vmem:[%s8268_s4 + $0x38] sm:$0xff] }
 0x1b1   :  { %6906 = vmatpush3.bf16.msra.mxu0 %v7420_v49  ;;  %6147 = vmatprep.mubr.f32.mxu0 %v4999_v4 }
 0x1b2   :  { %6908 = vmatprep.subr.bf16.mxu0 %v7428_v58 }
 0x1b5   :  { %6910 = vmatpush3.bf16.msra.mxu0 %v7428_v58 }
 0x1b6   :  { %6912 = vmatprep.subr.bf16.mxu0 %v7436_v3 }
 0x1b9   :  { %6914 = vmatpush3.bf16.msra.mxu0 %v7436_v3 }
 0x1ba   :  { %6916 = vmatprep.subr.bf16.mxu0 %v7444_v12 }
 0x1bd   :  { %6918 = vmatpush3.bf16.msra.mxu0 %v7444_v12 }
 0x1be   :  { %6920 = vmatprep.subr.bf16.mxu0 %v7452_v21 }
 0x1c1   :  { %6922 = vmatpush3.bf16.msra.mxu0 %v7452_v21 }
 0x1c2   :  { %6924 = vmatprep.subr.bf16.mxu0 %v7460_v31 }
 0x1c5   :  { %6926 = vmatpush3.bf16.msra.mxu0 %v7460_v31 }
 0x1c6   :  { %6928 = vmatprep.subr.bf16.mxu0 %v7466_v27 }
 0x1c9   :  { %6930 = vmatpush3.bf16.msra.mxu0 %v7466_v27 }
 0x1ca   :  { %6964 = vmatprep.subr.bf16.mxu0 %v7412_v40 }
 0x1cc   :  { %6148 = vmatmul.mubr.f32.vlgmr.msra.gmra.mrb[40].mxu0 %v5000_v5 }
 0x1cd   :  { %6966 = vmatpush3.bf16.msra.mxu0 %v7412_v40  ;;  %6150 = vmatprep.mubr.f32.mxu0 %v5001_v6  ;;  %v4981_v6 = vld [vmem:[%s8266_s3 + $0x100] sm:$0xff] }
 0x1ce   :  { %6968 = vmatprep.subr.bf16.mxu0 %v7420_v49 }
 0x1d0   :  { %6151 = vmatmul.mubr.f32.gmra.mrb[42].mxu0 %v5002_v7  ;;  %v4985_v7 = vld [vmem:[%s8268_s4 + $0x40] sm:$0xff] }
 0x1d1   :  { %6970 = vmatpush3.bf16.msra.mxu0 %v7420_v49  ;;  %6239 = vmatprep.mubr.f32.mxu0 %v5017_v8  ;;  %v4982_v8 = vld [vmem:[%s8266_s3 + $0x108] sm:$0xff] }
 0x1d2   :  { %6972 = vmatprep.subr.bf16.mxu0 %v7428_v58 }
 0x1d5   :  { %6974 = vmatpush3.bf16.msra.mxu0 %v7428_v58 }
 0x1d6   :  { %6976 = vmatprep.subr.bf16.mxu0 %v7436_v3 }
 0x1d9   :  { %6978 = vmatpush3.bf16.msra.mxu0 %v7436_v3 }
 0x1da   :  { %6980 = vmatprep.subr.bf16.mxu0 %v7444_v12 }
 0x1dd   :  { %6982 = vmatpush3.bf16.msra.mxu0 %v7444_v12 }
 0x1de   :  { %6984 = vmatprep.subr.bf16.mxu0 %v7452_v21 }
 0x1df   :  { %v5727_v9 = vpop.f32.mrb[16].mxu0  ;;  %v5689_v10 = vpop.f32.mrb[0].mxu1 }
 0x1e0   :  { %v472_v11 = vpop.f32.mrb[17].mxu0  ;;  %v381_v13 = vpop.f32.mrb[1].mxu1 }
 0x1e1   :  { %5733 = vmatprep.mubr.msk.f32.mxu1 %vm493_vm1, %v472_v11  ;;  %6986 = vmatpush3.bf16.msra.mxu0 %v7452_v21  ;;  %v4994_v11 = vld [vmem:[%s8268_s4 + $0x48] sm:$0xff] }
 0x1e2   :  { %5734 = vmatmul.mubr.msk.f32.vlgmr.msra.gmra.mrb[4].mxu1 %vm493_vm1, %v5727_v9  ;;  %6988 = vmatprep.subr.bf16.mxu0 %v7460_v31  ;;  %v4983_v9 = vld [vmem:[%s8266_s3 + $0x110] sm:$0xff] }
 0x1e3   :  { %v5730_v15 = vpop.f32.mrb[18].mxu0  ;;  %5740 = vmatpush3.msra.mxu1 %v7570_v54  ;;  %v5692_v16 = vpop.f32.mrb[2].mxu1  ;;  %v4967_v54 = vld [vmem:[%s8268_s4 + $0x30] sm:$0xff] }
 0x1e4   :  { %v482_v17 = vpop.f32.mrb[19].mxu0  ;;  %5785 = vmatprep.subr.mxu1 %v4931_v14  ;;  %v391_v18 = vpop.f32.mrb[3].mxu1 }
 0x1e5   :  { %5736 = vmatprep.mubr.msk.f32.mxu1 %vm493_vm1, %v482_v17  ;;  %6990 = vmatpush3.bf16.msra.mxu0 %v7460_v31 }
 0x1e6   :  { %5737 = vmatmul.mubr.msk.f32.gmra.mrb[6].mxu1 %vm493_vm1, %v5730_v15  ;;  %6992 = vmatprep.subr.bf16.mxu0 %v7466_v27 }
 0x1e7   :  { %5741 = vmatprep.mubr.msk.f32.mxu1 %vm493_vm1, %v381_v13 }
 0x1e9   :  { %6994 = vmatpush3.bf16.msra.mxu0 %v7466_v27 }
 0x1ea   :  { %5742 = vmatmul.mubr.msk.f32.vlgmr.msra.gmra.mrb[4].mxu1 %vm493_vm1, %v5689_v10  ;;  %7028 = vmatprep.subr.bf16.mxu0 %v7412_v40  ;;  %v4984_v10 = vld [vmem:[%s8266_s3 + $0x118] sm:$0xff] }
 0x1eb   :  { %5786 = vmatpush3.msra.mxu1 %v4931_v14  ;;  %5744 = vmatprep.mubr.msk.f32.mxu1 %vm493_vm1, %v391_v18 }
 0x1ec   :  { %6676 = vmatprep.subr.bf16.mxu1 %v7412_v40  ;;  %6240 = vmatmul.mubr.f32.vlgmr.msra.gmra.mrb[44].mxu0 %v5018_v19 }
 0x1ed   :  { %7030 = vmatpush3.bf16.msra.mxu0 %v7412_v40  ;;  %6242 = vmatprep.mubr.f32.mxu0 %v5019_v20 }
 0x1ee   :  { %7032 = vmatprep.subr.bf16.mxu0 %v7420_v49  ;;  %5745 = vmatmul.mubr.msk.f32.gmra.mrb[6].mxu1 %vm493_vm1, %v5692_v16 }
 0x1f0   :  { %6243 = vmatmul.mubr.f32.gmra.mrb[46].mxu0 %v5020_v22  ;;  %v5003_v22 = vld [vmem:[%s8268_s4 + $0x50] sm:$0xff] }
 0x1f1   :  { %7034 = vmatpush3.bf16.msra.mxu0 %v7420_v49  ;;  %6331 = vmatprep.mubr.f32.mxu0 %v5035_v23 }
 0x1f2   :  { %7036 = vmatprep.subr.bf16.mxu0 %v7428_v58 }
 0x1f5   :  { %7038 = vmatpush3.bf16.msra.mxu0 %v7428_v58 }
 0x1f6   :  { %7040 = vmatprep.subr.bf16.mxu0 %v7436_v3 }
 0x1f9   :  { %7042 = vmatpush3.bf16.msra.mxu0 %v7436_v3 }
 0x1fa   :  { %7044 = vmatprep.subr.bf16.mxu0 %v7444_v12 }
 0x1fd   :  { %7046 = vmatpush3.bf16.msra.mxu0 %v7444_v12 }
 0x1fe   :  { %7048 = vmatprep.subr.bf16.mxu0 %v7452_v21 }
 0x1ff   :  { %v5781_v24 = vpop.f32.mrb[20].mxu0 }
 0x200   :  { %v759_v25 = vpop.f32.mrb[21].mxu0 }
 0x201   :  { %5787 = vmatprep.mubr.msk.f32.mxu1 %vm493_vm1, %v759_v25  ;;  %7050 = vmatpush3.bf16.msra.mxu0 %v7452_v21  ;;  %v5008_v25 = vld [vmem:[%s8266_s3 + $0x160] sm:$0xff] }
 0x202   :  { %5788 = vmatmul.mubr.msk.f32.vlgmr.msra.gmra.mrb[4].mxu1 %vm493_vm1, %v5781_v24  ;;  %7052 = vmatprep.subr.bf16.mxu0 %v7460_v31 }
 0x203   :  { %6678 = vmatpush3.bf16.msra.mxu1 %v7412_v40  ;;  %v5784_v26 = vpop.f32.mrb[22].mxu0 }
 0x204   :  { %6680 = vmatprep.subr.bf16.mxu1 %v7420_v49  ;;  %v769_v28 = vpop.f32.mrb[23].mxu0 }
 0x205   :  { %7054 = vmatpush3.bf16.msra.mxu0 %v7460_v31  ;;  %5790 = vmatprep.mubr.msk.f32.mxu1 %vm493_vm1, %v769_v28  ;;  %v5009_v28 = vld [vmem:[%s8266_s3 + $0x168] sm:$0xff] }
 0x206   :  { %7056 = vmatprep.subr.bf16.mxu0 %v7466_v27  ;;  %5791 = vmatmul.mubr.msk.f32.gmra.mrb[6].mxu1 %vm493_vm1, %v5784_v26  ;;  %v5012_v26 = vld [vmem:[%s8268_s4 + $0x58] sm:$0xff] }
 0x207   :  { %6682 = vmatpush3.bf16.msra.mxu1 %v7420_v49  ;;  %5825 = vmatprep.mubr.f32.mxu1 %v4936_v29  ;;  %v5010_v29 = vld [vmem:[%s8266_s3 + $0x170] sm:$0xff] }
 0x208   :  { %6684 = vmatprep.subr.bf16.mxu1 %v7428_v58 }
 0x209   :  { %7058 = vmatpush3.bf16.msra.mxu0 %v7466_v27 }
 0x20a   :  { %7060 = vmatprep.subr.bf16.mxu0 %v7412_v40 }
 0x20b   :  { %6686 = vmatpush3.bf16.msra.mxu1 %v7428_v58 }
 0x20c   :  { %6688 = vmatprep.subr.bf16.mxu1 %v7436_v3  ;;  %6332 = vmatmul.mubr.f32.vlgmr.msra.gmra.mrb[48].mxu0 %v5036_v30  ;;  %v5011_v30 = vld [vmem:[%s8266_s3 + $0x178] sm:$0xff] }
 0x20d   :  { %7062 = vmatpush3.bf16.msra.mxu0 %v7412_v40 }
 0x20e   :  { %7064 = vmatprep.subr.bf16.mxu0 %v7420_v49 }
 0x20f   :  { %6690 = vmatpush3.bf16.msra.mxu1 %v7436_v3 }
 0x210   :  { %6692 = vmatprep.subr.bf16.mxu1 %v7444_v12 }
 0x211   :  { %7066 = vmatpush3.bf16.msra.mxu0 %v7420_v49 }
 0x212   :  { %7068 = vmatprep.subr.bf16.mxu0 %v7428_v58 }
 0x213   :  { %6694 = vmatpush3.bf16.msra.mxu1 %v7444_v12 }
 0x214   :  { %6696 = vmatprep.subr.bf16.mxu1 %v7452_v21 }
 0x215   :  { %7070 = vmatpush3.bf16.msra.mxu0 %v7428_v58 }
 0x216   :  { %7072 = vmatprep.subr.bf16.mxu0 %v7436_v3 }
 0x217   :  { %6698 = vmatpush3.bf16.msra.mxu1 %v7452_v21 }
 0x218   :  { %6700 = vmatprep.subr.bf16.mxu1 %v7460_v31 }
 0x219   :  { %7074 = vmatpush3.bf16.msra.mxu0 %v7436_v3 }
 0x21a   :  { %7076 = vmatprep.subr.bf16.mxu0 %v7444_v12 }
 0x21b   :  { %6702 = vmatpush3.bf16.msra.mxu1 %v7460_v31 }
 0x21c   :  { %6704 = vmatprep.subr.bf16.mxu1 %v7466_v27 }
 0x21d   :  { %7078 = vmatpush3.bf16.msra.mxu0 %v7444_v12 }
 0x21e   :  { %7080 = vmatprep.subr.bf16.mxu0 %v7452_v21 }
 0x21f   :  { %6706 = vmatpush3.bf16.msra.mxu1 %v7466_v27  ;;  %v5873_v37 = vpop.f32.mrb[24].mxu0 }
 0x220   :  { %5831 = vmatprep.subr.mxu1 %v4940_v32  ;;  %v1145_v38 = vpop.f32.mrb[25].mxu0 }
 0x221   :  { %7082 = vmatpush3.bf16.msra.mxu0 %v7452_v21 }
 0x222   :  { %5826 = vmatmul.mubr.f32.vlgmr.msra.gmra.mrb[8].mxu1 %v4937_v33  ;;  %7084 = vmatprep.subr.bf16.mxu0 %v7460_v31 }
 0x223   :  { %5828 = vmatprep.mubr.f32.mxu1 %v4938_v34  ;;  %5832 = vmatpush3.msra.mxu1 %v4940_v32  ;;  %v5876_v39 = vpop.f32.mrb[26].mxu0  ;;  %v5021_v32 = vld [vmem:[%s8268_s4 + $0x60] sm:$0xff] }
 0x224   :  { %5877 = vmatprep.subr.mxu1 %v4949_v36  ;;  %v1155_v41 = vpop.f32.mrb[27].mxu0 }
 0x225   :  { %7086 = vmatpush3.bf16.msra.mxu0 %v7460_v31 }
 0x226   :  { %5829 = vmatmul.mubr.f32.gmra.mrb[10].mxu1 %v4939_v35  ;;  %7088 = vmatprep.subr.bf16.mxu0 %v7466_v27 }
 0x229   :  { %7090 = vmatpush3.bf16.msra.mxu0 %v7466_v27 }
 0x23f   :  { %v7783_v42 = vpop.f32.mrb[28].mxu0 }
 0x240   :  { %v1531_v43 = vpop.f32.mrb[29].mxu0 }
 0x243   :  { %v5968_v55 = vpop.f32.mrb[30].mxu0 }
 0x244   :  { %v1541_v56 = vpop.f32.mrb[31].mxu0 }
 0x25f   :  { %v6011_v57 = vpop.f32.mrb[32].mxu0 }
 0x260   :  { %v1724_v59 = vpop.f32.mrb[33].mxu0 }
 0x263   :  { %v6014_v60 = vpop.f32.mrb[34].mxu0 }
 0x264   :  { %v1734_v61 = vpop.f32.mrb[35].mxu0 }
 0x27f   :  { %v7827_v62 = vpop.f32.mrb[36].mxu0 }
 0x280   :  { %v7829_v63 = vpop.f32.mrb[37].mxu0 }
 0x283   :  { %v6106_v13 = vpop.f32.mrb[38].mxu0 }
 0x284   :  { %v2120_v14 = vpop.f32.mrb[39].mxu0 }
 0x29f   :  { %v6149_v15 = vpop.f32.mrb[40].mxu0 }
 0x2a0   :  { %v2303_v16 = vpop.f32.mrb[41].mxu0 }
 0x2a3   :  { %v6152_v17 = vpop.f32.mrb[42].mxu0 }
 0x2a4   :  { %v2313_v18 = vpop.f32.mrb[43].mxu0 }
 0x2bf   :  { %v6241_v33 = vpop.f32.mrb[44].mxu0 }
 0x2c0   :  { %v2689_v34 = vpop.f32.mrb[45].mxu0 }
 0x2c3   :  { %v6244_v35 = vpop.f32.mrb[46].mxu0 }
 0x2f5   :  { %v5827_v44 = vpop.f32.mrb[8].mxu1 }
 0x2f6   :  { %v952_v45 = vpop.f32.mrb[9].mxu1 }
 0x2f7   :  { %5833 = vmatprep.mubr.msk.f32.mxu1 %vm493_vm1, %v952_v45  ;;  %v5047_v45 = vld [vmem:[%s8266_s3 + $0x1f8] sm:$0xff] }
 0x2f8   :  { %5834 = vmatmul.mubr.msk.f32.vlgmr.msra.gmra.mrb[4].mxu1 %vm493_vm1, %v5827_v44  ;;  %v5046_v44 = vld [vmem:[%s8266_s3 + $0x1f0] sm:$0xff] }
 0x2f9   :  { %5878 = vmatpush3.msra.mxu1 %v4949_v36  ;;  %v5830_v46 = vpop.f32.mrb[10].mxu1  ;;  %v2699_v36 = vpop.f32.mrb[47].mxu0 }
 0x2fa   :  { %6740 = vmatprep.subr.bf16.mxu1 %v7412_v40  ;;  %v962_v47 = vpop.f32.mrb[11].mxu1 }
 0x2fb   :  { %5836 = vmatprep.mubr.msk.f32.mxu1 %vm493_vm1, %v962_v47 }
 0x2fc   :  { %5837 = vmatmul.mubr.msk.f32.gmra.mrb[6].mxu1 %vm493_vm1, %v5830_v46 }
 0x2fd   :  { %5879 = vmatprep.mubr.msk.f32.mxu1 %vm493_vm1, %v1145_v38  ;;  %v5038_v38 = vld [vmem:[%s8266_s3 + $0x1d8] sm:$0xff] }
 0x300   :  { %5880 = vmatmul.mubr.msk.f32.vlgmr.msra.gmra.mrb[4].mxu1 %vm493_vm1, %v5873_v37  ;;  %v5037_v37 = vld [vmem:[%s8266_s3 + $0x1d0] sm:$0xff] }
 0x301   :  { %6742 = vmatpush3.bf16.msra.mxu1 %v7412_v40  ;;  %5882 = vmatprep.mubr.msk.f32.mxu1 %vm493_vm1, %v1155_v41  ;;  %v7941_v41 = vpop.f32.mrb[48].mxu0 }
 0x302   :  { %6744 = vmatprep.subr.bf16.mxu1 %v7420_v49  ;;  %6334 = vmatprep.mubr.f32.mxu0 %v5037_v37 }
 0x303   :  { %6335 = vmatmul.mubr.f32.gmra.mrb[50].mxu0 %v5038_v38 }
 0x304   :  { %5883 = vmatmul.mubr.msk.f32.gmra.mrb[6].mxu1 %vm493_vm1, %v5876_v39  ;;  %v5044_v39 = vld [vmem:[%s8266_s3 + $0x1e0] sm:$0xff] }
 0x305   :  { %6746 = vmatpush3.bf16.msra.mxu1 %v7420_v49  ;;  %5917 = vmatprep.mubr.f32.mxu1 %v4954_v48 }
 0x306   :  { %6748 = vmatprep.subr.bf16.mxu1 %v7428_v58  ;;  %6377 = vmatprep.mubr.f32.mxu0 %v5044_v39 }
 0x309   :  { %6750 = vmatpush3.bf16.msra.mxu1 %v7428_v58 }
 0x30a   :  { %6752 = vmatprep.subr.bf16.mxu1 %v7436_v3 }
 0x30d   :  { %6754 = vmatpush3.bf16.msra.mxu1 %v7436_v3 }
 0x30e   :  { %6756 = vmatprep.subr.bf16.mxu1 %v7444_v12 }
 0x311   :  { %6758 = vmatpush3.bf16.msra.mxu1 %v7444_v12 }
 0x312   :  { %6760 = vmatprep.subr.bf16.mxu1 %v7452_v21 }
 0x315   :  { %6762 = vmatpush3.bf16.msra.mxu1 %v7452_v21 }
 0x316   :  { %6764 = vmatprep.subr.bf16.mxu1 %v7460_v31 }
 0x319   :  { %6766 = vmatpush3.bf16.msra.mxu1 %v7460_v31 }
 0x31a   :  { %6768 = vmatprep.subr.bf16.mxu1 %v7466_v27 }
 0x31d   :  { %6770 = vmatpush3.bf16.msra.mxu1 %v7466_v27 }
 0x31e   :  { %5923 = vmatprep.subr.mxu1 %v4958_v50 }
 0x320   :  { %5918 = vmatmul.mubr.f32.vlgmr.msra.gmra.mrb[12].mxu1 %v4955_v51  ;;  %v5026_v51 = vld [vmem:[%s8266_s3 + $0x1a0] sm:$0xff] }
 0x321   :  { %5920 = vmatprep.mubr.f32.mxu1 %v4956_v52  ;;  %5924 = vmatpush3.msra.mxu1 %v4958_v50 }
 0x322   :  { %5969 = vmatprep.subr.mxu1 %v4967_v54 }
 0x324   :  { %5921 = vmatmul.mubr.f32.gmra.mrb[14].mxu1 %v4957_v53 }
 0x3f3   :  { %v5919_v0 = vpop.f32.mrb[12].mxu1 }
 0x3f4   :  { %v1338_v1 = vpop.f32.mrb[13].mxu1 }
 0x3f5   :  { %5925 = vmatprep.mubr.msk.f32.mxu1 %vm493_vm1, %v1338_v1 }
 0x3f6   :  { %5926 = vmatmul.mubr.msk.f32.vlgmr.msra.gmra.mrb[4].mxu1 %vm493_vm1, %v5919_v0 }
 0x3f7   :  { %5970 = vmatpush3.msra.mxu1 %v4967_v54  ;;  %v5922_v4 = vpop.f32.mrb[14].mxu1 }
 0x3f8   :  { %v1348_v5 = vpop.f32.mrb[15].mxu1  ;;  %6015 = vmatprep.subr.mxu1 %v4976_v2 }
 0x3f9   :  { %5928 = vmatprep.mubr.msk.f32.mxu1 %vm493_vm1, %v1348_v5 }
 0x3fa   :  { %5929 = vmatmul.mubr.msk.f32.gmra.mrb[6].mxu1 %vm493_vm1, %v5922_v4 }
 0x3fb   :  { %5971 = vmatprep.mubr.msk.f32.mxu1 %vm493_vm1, %v1531_v43  ;;  %v5045_v43 = vld [vmem:[%s8266_s3 + $0x1e8] sm:$0xff] }
 0x3fc   :  { %6378 = vmatmul.mubr.f32.vlgmr.msra.gmra.mrb[52].mxu0 %v5045_v43 }
 0x3fd   :  { %6380 = vmatprep.mubr.f32.mxu0 %v5046_v44 }
 0x3fe   :  { %5972 = vmatmul.mubr.msk.f32.vlgmr.msra.gmra.mrb[4].mxu1 %vm493_vm1, %v7783_v42  ;;  %v7943_v42 = vpop.f32.mrb[49].mxu0 }
 0x3ff   :  { %6016 = vmatpush3.msra.mxu1 %v4976_v2  ;;  %5974 = vmatprep.mubr.msk.f32.mxu1 %vm493_vm1, %v1541_v56 }
 0x400   :  { %6836 = vmatprep.subr.bf16.mxu1 %v7412_v40  ;;  %6381 = vmatmul.mubr.f32.gmra.mrb[54].mxu0 %v5047_v45 }
 0x402   :  { %5975 = vmatmul.mubr.msk.f32.gmra.mrb[6].mxu1 %vm493_vm1, %v5968_v55 }
 0x403   :  { %6017 = vmatprep.mubr.msk.f32.mxu1 %vm493_vm1, %v1724_v59 }
 0x406   :  { %6018 = vmatmul.mubr.msk.f32.vlgmr.msra.gmra.mrb[4].mxu1 %vm493_vm1, %v6011_v57  ;;  %v5048_v57 = vld [vmem:[%s8268_s4 + $0x78] sm:$0xff] }
 0x407   :  { %6838 = vmatpush3.bf16.msra.mxu1 %v7412_v40  ;;  %6020 = vmatprep.mubr.msk.f32.mxu1 %vm493_vm1, %v1734_v61  ;;  %v7252_v61 = vmov 0.0|0.0  }
 0x408   :  { %6840 = vmatprep.subr.bf16.mxu1 %v7420_v49  ;;  %7103 = vmatprep.subr.bf16.mxu0 %v7252_v61 }
 0x40a   :  { %6021 = vmatmul.mubr.msk.f32.gmra.mrb[6].mxu1 %vm493_vm1, %v6014_v60 }
 0x40b   :  { %6842 = vmatpush3.bf16.msra.mxu1 %v7420_v49  ;;  %6055 = vmatprep.mubr.f32.mxu1 %v4981_v6 }
 0x40c   :  { %6844 = vmatprep.subr.bf16.mxu1 %v7428_v58 }
 0x40f   :  { %6846 = vmatpush3.bf16.msra.mxu1 %v7428_v58 }
 0x410   :  { %6848 = vmatprep.subr.bf16.mxu1 %v7436_v3 }
 0x413   :  { %6850 = vmatpush3.bf16.msra.mxu1 %v7436_v3 }
 0x414   :  { %6852 = vmatprep.subr.bf16.mxu1 %v7444_v12 }
 0x417   :  { %6854 = vmatpush3.bf16.msra.mxu1 %v7444_v12 }
 0x418   :  { %6856 = vmatprep.subr.bf16.mxu1 %v7452_v21 }
 0x41b   :  { %6858 = vmatpush3.bf16.msra.mxu1 %v7452_v21 }
 0x41c   :  { %6860 = vmatprep.subr.bf16.mxu1 %v7460_v31 }
 0x41f   :  { %6862 = vmatpush3.bf16.msra.mxu1 %v7460_v31 }
 0x420   :  { %6864 = vmatprep.subr.bf16.mxu1 %v7466_v27 }
 0x423   :  { %6866 = vmatpush3.bf16.msra.mxu1 %v7466_v27 }
 0x424   :  { %6061 = vmatprep.subr.mxu1 %v4985_v7 }
 0x426   :  { %6056 = vmatmul.mubr.f32.vlgmr.msra.gmra.mrb[16].mxu1 %v4982_v8 }
 0x427   :  { %6058 = vmatprep.mubr.f32.mxu1 %v4983_v9  ;;  %6062 = vmatpush3.msra.mxu1 %v4985_v7 }
 0x428   :  { %6107 = vmatprep.subr.mxu1 %v4994_v11 }
 0x42a   :  { %6059 = vmatmul.mubr.f32.gmra.mrb[18].mxu1 %v4984_v10 }
 0x4f9   :  { %v6057_v19 = vpop.f32.mrb[16].mxu1 }
 0x4fa   :  { %v1917_v20 = vpop.f32.mrb[17].mxu1 }
 0x4fb   :  { %6063 = vmatprep.mubr.msk.f32.mxu1 %vm493_vm1, %v1917_v20 }
 0x4fc   :  { %6064 = vmatmul.mubr.msk.f32.vlgmr.msra.gmra.mrb[4].mxu1 %vm493_vm1, %v6057_v19 }
 0x4fd   :  { %6108 = vmatpush3.msra.mxu1 %v4994_v11  ;;  %v6060_v23 = vpop.f32.mrb[18].mxu1 }
 0x4fe   :  { %v1927_v24 = vpop.f32.mrb[19].mxu1  ;;  %6153 = vmatprep.subr.mxu1 %v5003_v22 }
 0x4ff   :  { %6066 = vmatprep.mubr.msk.f32.mxu1 %vm493_vm1, %v1927_v24 }
 0x500   :  { %6067 = vmatmul.mubr.msk.f32.gmra.mrb[6].mxu1 %vm493_vm1, %v6060_v23 }
 0x501   :  { %6109 = vmatprep.mubr.msk.f32.mxu1 %vm493_vm1, %v7829_v63  ;;  %v5053_v63 = vld [vmem:[%s8269_s5] ss:$0 sm:$0xff] }
 0x504   :  { %6110 = vmatmul.mubr.msk.f32.vlgmr.msra.gmra.mrb[4].mxu1 %vm493_vm1, %v7827_v62  ;;  %v7254_v62 = vmov 0.0  }
 0x505   :  { %6154 = vmatpush3.msra.mxu1 %v5003_v22  ;;  %6112 = vmatprep.mubr.msk.f32.mxu1 %vm493_vm1, %v2120_v14 }
 0x506   :  { %6932 = vmatprep.subr.bf16.mxu1 %v7412_v40  ;;  %6421 = vmatprep.mubr.msk.f32.mxu0 %vm7253_vm2, %v7254_v62 }
 0x508   :  { %6113 = vmatmul.mubr.msk.f32.gmra.mrb[6].mxu1 %vm493_vm1, %v6106_v13 }
 0x509   :  { %6155 = vmatprep.mubr.msk.f32.mxu1 %vm493_vm1, %v2303_v16 }
 0x50c   :  { %6156 = vmatmul.mubr.msk.f32.vlgmr.msra.gmra.mrb[4].mxu1 %vm493_vm1, %v6149_v15 }
 0x50d   :  { %6934 = vmatpush3.bf16.msra.mxu1 %v7412_v40  ;;  %6158 = vmatprep.mubr.msk.f32.mxu1 %vm493_vm1, %v2313_v18 }
 0x50e   :  { %6936 = vmatprep.subr.bf16.mxu1 %v7420_v49 }
 0x510   :  { %6159 = vmatmul.mubr.msk.f32.gmra.mrb[6].mxu1 %vm493_vm1, %v6152_v17 }
 0x511   :  { %6938 = vmatpush3.bf16.msra.mxu1 %v7420_v49  ;;  %6193 = vmatprep.mubr.f32.mxu1 %v5008_v25 }
 0x512   :  { %6940 = vmatprep.subr.bf16.mxu1 %v7428_v58 }
 0x515   :  { %6942 = vmatpush3.bf16.msra.mxu1 %v7428_v58 }
 0x516   :  { %6944 = vmatprep.subr.bf16.mxu1 %v7436_v3 }
 0x519   :  { %6946 = vmatpush3.bf16.msra.mxu1 %v7436_v3 }
 0x51a   :  { %6948 = vmatprep.subr.bf16.mxu1 %v7444_v12 }
 0x51d   :  { %6950 = vmatpush3.bf16.msra.mxu1 %v7444_v12 }
 0x51e   :  { %6952 = vmatprep.subr.bf16.mxu1 %v7452_v21 }
 0x521   :  { %6954 = vmatpush3.bf16.msra.mxu1 %v7452_v21 }
 0x522   :  { %6956 = vmatprep.subr.bf16.mxu1 %v7460_v31 }
 0x525   :  { %6958 = vmatpush3.bf16.msra.mxu1 %v7460_v31 }
 0x526   :  { %6960 = vmatprep.subr.bf16.mxu1 %v7466_v27 }
 0x529   :  { %6962 = vmatpush3.bf16.msra.mxu1 %v7466_v27 }
 0x52a   :  { %6199 = vmatprep.subr.mxu1 %v5012_v26 }
 0x52c   :  { %6194 = vmatmul.mubr.f32.vlgmr.msra.gmra.mrb[20].mxu1 %v5009_v28 }
 0x52d   :  { %6196 = vmatprep.mubr.f32.mxu1 %v5010_v29  ;;  %6200 = vmatpush3.msra.mxu1 %v5012_v26 }
 0x52e   :  { %6245 = vmatprep.subr.mxu1 %v5021_v32 }
 0x530   :  { %6197 = vmatmul.mubr.f32.gmra.mrb[22].mxu1 %v5011_v30 }
 0x5ff   :  { %v6195_v46 = vpop.f32.mrb[20].mxu1 }
 0x600   :  { %v2496_v47 = vpop.f32.mrb[21].mxu1 }
 0x601   :  { %6201 = vmatprep.mubr.msk.f32.mxu1 %vm493_vm1, %v2496_v47 }
 0x602   :  { %6202 = vmatmul.mubr.msk.f32.vlgmr.msra.gmra.mrb[4].mxu1 %vm493_vm1, %v6195_v46 }
 0x603   :  { %6246 = vmatpush3.msra.mxu1 %v5021_v32  ;;  %v6198_v48 = vpop.f32.mrb[22].mxu1 }
 0x604   :  { %6996 = vmatprep.subr.bf16.mxu1 %v7412_v40  ;;  %v2506_v50 = vpop.f32.mrb[23].mxu1 }
 0x605   :  { %6204 = vmatprep.mubr.msk.f32.mxu1 %vm493_vm1, %v2506_v50 }
 0x606   :  { %6205 = vmatmul.mubr.msk.f32.gmra.mrb[6].mxu1 %vm493_vm1, %v6198_v48 }
 0x607   :  { %6247 = vmatprep.mubr.msk.f32.mxu1 %vm493_vm1, %v2689_v34 }
 0x60a   :  { %6248 = vmatmul.mubr.msk.f32.vlgmr.msra.gmra.mrb[4].mxu1 %vm493_vm1, %v6241_v33 }
 0x60b   :  { %6998 = vmatpush3.bf16.msra.mxu1 %v7412_v40  ;;  %6250 = vmatprep.mubr.msk.f32.mxu1 %vm493_vm1, %v2699_v36  ;;  %v5030_v40 = vld [vmem:[%s8268_s4 + $0x68] sm:$0xff] }
 0x60c   :  { %7000 = vmatprep.subr.bf16.mxu1 %v7420_v49 }
 0x60e   :  { %6251 = vmatmul.mubr.msk.f32.gmra.mrb[6].mxu1 %vm493_vm1, %v6244_v35 }
 0x60f   :  { %7002 = vmatpush3.bf16.msra.mxu1 %v7420_v49  ;;  %6285 = vmatprep.mubr.f32.mxu1 %v5026_v51  ;;  %v5027_v49 = vld [vmem:[%s8266_s3 + $0x1a8] sm:$0xff]  ;;  %v3445_v51 = vlaneseq }
 0x610   :  { %7004 = vmatprep.subr.bf16.mxu1 %v7428_v58 }
 0x613   :  { %7006 = vmatpush3.bf16.msra.mxu1 %v7428_v58  ;;  %v5028_v58 = vld [vmem:[%s8266_s3 + $0x1b0] sm:$0xff] }
 0x614   :  { %7008 = vmatprep.subr.bf16.mxu1 %v7436_v3 }
 0x617   :  { %7010 = vmatpush3.bf16.msra.mxu1 %v7436_v3  ;;  %v5029_v3 = vld [vmem:[%s8266_s3 + $0x1b8] sm:$0xff] }
 0x618   :  { %7012 = vmatprep.subr.bf16.mxu1 %v7444_v12 }
 0x61b   :  { %7014 = vmatpush3.bf16.msra.mxu1 %v7444_v12  ;;  %v5039_v12 = vld [vmem:[%s8268_s4 + $0x70] sm:$0xff] }
 0x61c   :  { %7016 = vmatprep.subr.bf16.mxu1 %v7452_v21 }
 0x61f   :  { %7018 = vmatpush3.bf16.msra.mxu1 %v7452_v21  ;;  %v6336_v21 = vpop.f32.mrb[50].mxu0 }
 0x620   :  { %7020 = vmatprep.subr.bf16.mxu1 %v7460_v31 }
 0x623   :  { %7022 = vmatpush3.bf16.msra.mxu1 %v7460_v31  ;;  %v3085_v31 = vpop.f32.mrb[51].mxu0 }
 0x624   :  { %7024 = vmatprep.subr.bf16.mxu1 %v7466_v27 }
 0x627   :  { %7026 = vmatpush3.bf16.msra.mxu1 %v7466_v27  ;;  %v6379_v27 = vpop.f32.mrb[52].mxu0 }
 0x628   :  { %6291 = vmatprep.subr.mxu1 %v5030_v40  ;;  %v3268_v52 = vpop.f32.mrb[53].mxu0 }
 0x629   :  { %v6382_v53 = vpop.f32.mrb[54].mxu0 }
 0x62a   :  { %6286 = vmatmul.mubr.f32.vlgmr.msra.gmra.mrb[24].mxu1 %v5027_v49  ;;  %v3278_v54 = vpop.f32.mrb[55].mxu0  ;;  %v3437_v49 = vld [vmem:[%s8270_s6] sm:$0x1] }
 0x62b   :  { %6288 = vmatprep.mubr.f32.mxu1 %v5028_v58  ;;  %6292 = vmatpush3.msra.mxu1 %v5030_v40  ;;  %v3446_v40 = vshrl.u32 %v3445_v51, 7 }
 0x62c   :  { %6337 = vmatprep.subr.mxu1 %v5039_v12 }
 0x62d   :  { %v3447_v58 = vsub.s32 0, %v3446_v40  ;;  %v5067_v40 = vld [vmem:[%s8273_s9 + $0x3] ss:$0 sm:$0xff] }
 0x62e   :  { %6289 = vmatmul.mubr.f32.gmra.mrb[26].mxu1 %v5029_v3 }
 0x6fd   :  { %v6287_v55 = vpop.f32.mrb[24].mxu1 }
 0x6fe   :  { %v2882_v56 = vpop.f32.mrb[25].mxu1 }
 0x6ff   :  { %6293 = vmatprep.mubr.msk.f32.mxu1 %vm493_vm1, %v2882_v56 }
 0x700   :  { %6294 = vmatmul.mubr.msk.f32.vlgmr.msra.gmra.mrb[4].mxu1 %vm493_vm1, %v6287_v55 }
 0x701   :  { %6338 = vmatpush3.msra.mxu1 %v5039_v12  ;;  %v6290_v59 = vpop.f32.mrb[26].mxu1 }
 0x702   :  { %v2892_v60 = vpop.f32.mrb[27].mxu1  ;;  %6383 = vmatprep.subr.mxu1 %v5048_v57 }
 0x703   :  { %6296 = vmatprep.mubr.msk.f32.mxu1 %vm493_vm1, %v2892_v60 }
 0x704   :  { %6297 = vmatmul.mubr.msk.f32.gmra.mrb[6].mxu1 %vm493_vm1, %v6290_v59 }
 0x705   :  { %6339 = vmatprep.mubr.msk.f32.mxu1 %vm493_vm1, %v7943_v42 }
 0x708   :  { %6340 = vmatmul.mubr.msk.f32.vlgmr.msra.gmra.mrb[4].mxu1 %vm493_vm1, %v7941_v41 }
 0x709   :  { %6384 = vmatpush3.msra.mxu1 %v5048_v57  ;;  %6342 = vmatprep.mubr.msk.f32.mxu1 %vm493_vm1, %v3085_v31 }
 0x70a   :  { %7091 = vmatprep.subr.bf16.mxu1 %v7252_v61 }
 0x70c   :  { %6343 = vmatmul.mubr.msk.f32.gmra.mrb[6].mxu1 %vm493_vm1, %v6336_v21  ;;  %v3441_v21 = vld [vmem:[%s8271_s7] sm:$0x1] }
 0x70d   :  { %6385 = vmatprep.mubr.msk.f32.mxu1 %vm493_vm1, %v3268_v52 }
 0x710   :  { %6386 = vmatmul.mubr.msk.f32.vlgmr.msra.gmra.mrb[4].mxu1 %vm493_vm1, %v6379_v27 }
 0x711   :  { %6388 = vmatprep.mubr.msk.f32.mxu1 %vm493_vm1, %v3278_v54 }
 0x714   :  { %6389 = vmatmul.mubr.msk.f32.gmra.mrb[6].mxu1 %vm493_vm1, %v6382_v53 }
 0x715   :  { %6399 = vmatprep.mubr.msk.f32.mxu1 %vm7253_vm2, %v7254_v62 }
 0x7e3   :  { %v6387_v0 = vpop.f32.mrb[4].mxu1 }
 0x7e4   :  { %v3398_v1 = vadd.f32 %v6387_v0, %v5053_v63  ;;  %v3367_v2 = vpop.f32.mrb[5].mxu1 }
 0x7e5   :  { %v3397_v4 = vadd.f32 %v5053_v63, %v3367_v2 }
 0x7e6   :  { %v3403_v5 = vsel %vm3401_vm3, %v3398_v1, 0.0  ;;  %v3417_v6 = vmul.f32 %v3398_v1, %v3398_v1 }
 0x7e7   :  { %v3402_v7 = vsel %vm3401_vm3, %v3397_v4, 0.0  ;;  %v3416_v8 = vmul.f32 %v3397_v4, %v3397_v4  ;;  %v6390_v9 = vpop.f32.mrb[6].mxu1 }
 0x7e8   :  { %v3421_v10 = vsel %vm3401_vm3, %v3417_v6, 0.0  ;;  %v3404_v11 = vadd.f32 %v3403_v5, %v3402_v7  ;;  %v3400_v13 = vadd.f32 %v6390_v9, %v5053_v63  ;;  %v3377_v14 = vpop.f32.mrb[7].mxu1 }
 0x7e9   :  { %v3420_v15 = vsel %vm3401_vm3, %v3416_v8, 0.0  ;;  %v3399_v16 = vadd.f32 %v5053_v63, %v3377_v14  ;;  %v5060_v14 = vld [vmem:[%s8272_s8 + $0x4] sm:$0x3] }
 0x7ea   :  { %v3422_v17 = vadd.f32 %v3421_v10, %v3420_v15  ;;  %v3419_v18 = vmul.f32 %v3400_v13, %v3400_v13  ;;  %v3407_v23 = vsel %vm3401_vm3, %v3400_v13, 0.0  ;;  %v5056_v15 = vld [vmem:[%s8272_s8 + $0x2] sm:$0x3] }
 0x7eb   :  { %v3405_v19 = vsel %vm3401_vm3, %v3399_v16, 0.0  ;;  %v3418_v20 = vmul.f32 %v3399_v16, %v3399_v16 }
 0x7ec   :  { %v3406_v22 = vadd.f32 %v3405_v19, %v3404_v11  ;;  %v3425_v28 = vsel %vm3401_vm3, %v3419_v18, 0.0  ;;  %v5076_v18 = vld [vmem:[%s8272_s8 + $0xc] sm:$0x3]  ;;  %v5072_v19 = vld [vmem:[%s8272_s8 + $0xa] sm:$0x3] }
 0x7ed   :  { %v3423_v24 = vsel %vm3401_vm3, %v3418_v20, 0.0  ;;  %v5084_v20 = vld [vmem:[%s8272_s8 + $0x10] sm:$0x3] }
 0x7ee   :  { %v3408_v25 = vadd.f32 %v3407_v23, %v3406_v22  ;;  %v3424_v26 = vadd.f32 %v3423_v24, %v3422_v17  ;;  %v5064_v17 = vld [vmem:[%s8272_s8 + $0x6] sm:$0x3]  ;;  %v5080_v22 = vld [vmem:[%s8272_s8 + $0xe] sm:$0x3]  ;;  %v5092_v23 = vld [vmem:[%s8272_s8 + $0x14] sm:$0x3] }
 0x7ef   :  { %v5088_v24 = vld [vmem:[%s8272_s8 + $0x12] sm:$0x3] }
 0x7f0   :  { %v3409_v29 = vrot.slane %v3408_v25, 4  ;;  %v3426_v30 = vadd.f32 %v3425_v28, %v3424_v26  ;;  %v5096_v26 = vld [vmem:[%s8272_s8 + $0x16] sm:$0x3]  ;;  %v5108_v28 = vld [vmem:[%s8272_s8 + $0x1c] sm:$0x3] }
 0x7f2   :  { %v3410_v32 = vadd.f32 %v3409_v29, %v3408_v25  ;;  %v3427_v33 = vrot.slane %v3426_v30, 4  ;;  %v5100_v25 = vld [vmem:[%s8272_s8 + $0x18] sm:$0x3]  ;;  %v5104_v29 = vld [vmem:[%s8272_s8 + $0x1a] sm:$0x3] }
 0x7f4   :  { %v3411_v34 = vrot.slane %v3410_v32, 2  ;;  %v3428_v35 = vadd.f32 %v3427_v33, %v3426_v30  ;;  %v5112_v30 = vld [vmem:[%s8272_s8 + $0x1e] sm:$0x3]  ;;  %v5063_v33 = vld [vmem:[%s8273_s9 + $0x2] ss:$0 sm:$0xff] }
 0x7f6   :  { %v3412_v36 = vadd.f32 %v3411_v34, %v3410_v32  ;;  %v3429_v37 = vrot.slane %v3428_v35, 2  ;;  %v5055_v32 = vld [vmem:[%s8273_s9] ss:$0 sm:$0xff] }
 0x7f8   :  { %v3413_v38 = vrot.slane %v3412_v36, 1  ;;  %v3430_v39 = vadd.f32 %v3429_v37, %v3428_v35 }
 0x7fa   :  { %v3414_v41 = vadd.f32 %v3413_v38, %v3412_v36  ;;  %v3431_v42 = vrot.slane %v3430_v39, 1 }
 0x7fc   :  { %v3415_v43 = vmul.f32 0.03125, %v3414_v41  ;;  %v3432_v44 = vadd.f32 %v3431_v42, %v3430_v39  ;;  %v5059_v41 = vld [vmem:[%s8273_s9 + $0x1] ss:$0 sm:$0xff]  ;;  %v5071_v42 = vld [vmem:[%s8273_s9 + $0x4] ss:$0 sm:$0xff] }
 0x7fe   :  { %v3433_v45 = vmul.f32 0.03125, %v3432_v44  ;;  %v3434_v46 = vmul.f32 %v3415_v43, %v3415_v43 }
 0x800   :  { %v3435_v47 = vsub.f32 %v3433_v45, %v3434_v46 }
 0x802   :  { %v3436_v48 = vmax.f32 %v3435_v47, 0.0 }
 0x804   :  { %v3438_v50 = vadd.f32 1e-05, %v3436_v48 }
 0x806   :  { %7250 = vrsqrt.f32 %v3438_v50 }
 0x810   :  { %v7251_v3 = vpop.eup %7250 }
 0x811   :  { %v3440_v12 = vmul.f32 %v7251_v3, %v3437_v49  ;;  %v5079_v49 = vld [vmem:[%s8273_s9 + $0x6] ss:$0 sm:$0xff] }
 0x813   :  { %v3442_v31 = vmul.f32 %v3440_v12, %v3415_v43  ;;  %v3448_v27 = vrot.slane %v3440_v12, %v3447_v58 }
 0x815   :  { %v3443_v52 = vsub.f32 %v3441_v21, %v3442_v31  ;;  %v3450_v53 = vmul.f32 %v3448_v27, %v3397_v4  ;;  %v3451_v54 = vmul.f32 %v3448_v27, %v3398_v1  ;;  %v3452_v55 = vmul.f32 %v3448_v27, %v3399_v16  ;;  %v5068_v16 = vld [vmem:[%s8272_s8 + $0x8] sm:$0x3] }
 0x816   :  { %v3453_v56 = vmul.f32 %v3448_v27, %v3400_v13  ;;  %v3476_v13 = vld [vmem:[%s8272_s8] sm:$0x3] }
 0x817   :  { %v3458_v57 = vrot.slane %v3443_v52, %v3447_v58 }
 0x819   :  { %v3460_v59 = vadd.f32 %v3458_v57, %v3450_v53  ;;  %v3461_v60 = vadd.f32 %v3458_v57, %v3451_v54  ;;  %v3462_v63 = vadd.f32 %v3458_v57, %v3452_v55  ;;  %v3463_v0 = vadd.f32 %v3458_v57, %v3453_v56  ;;  %v5075_v54 = vld [vmem:[%s8273_s9 + $0x5] ss:$0 sm:$0xff]  ;;  %v5087_v55 = vld [vmem:[%s8273_s9 + $0x8] ss:$0 sm:$0xff] }
 0x81b   :  { %vm3464_vm4 = vcmp.ge.f32.partialorder %v3460_v59, 0.0  ;;  %vm3465_vm5 = vcmp.ge.f32.partialorder %v3461_v60, 0.0  ;;  %vm3466_vm6 = vcmp.ge.f32.partialorder %v3462_v63, 0.0  ;;  %vm3467_vm7 = vcmp.ge.f32.partialorder %v3463_v0, 0.0 }
 0x81c   :  { %v3468_v2 = vmul.f32 0.2, %v3460_v59  ;;  %v3469_v5 = vmul.f32 0.2, %v3461_v60  ;;  %v3470_v6 = vmul.f32 0.2, %v3462_v63 }
 0x81d   :  { %v3471_v7 = vmul.f32 0.2, %v3463_v0 }
 0x81e   :  { %v3472_v8 = vsel %vm3464_vm4, %v3460_v59, %v3468_v2  ;;  %v3473_v9 = vsel %vm3465_vm5, %v3461_v60, %v3469_v5  ;;  %v3474_v10 = vsel %vm3466_vm6, %v3462_v63, %v3470_v6  ;;  %v5083_v6 = vld [vmem:[%s8273_s9 + $0x7] ss:$0 sm:$0xff] }
 0x81f   :  { %v3475_v4 = vsel %vm3467_vm7, %v3463_v0, %v3471_v7  ;;  %v8036_v1 = vpack.c.bf16 %v3473_v9, %v3472_v8  ;;  %v5095_v7 = vld [vmem:[%s8273_s9 + $0xa] ss:$0 sm:$0xff] }
 0x820   :  { %v8038_v11 = vpack.c.bf16 %v3475_v4, %v3474_v10 }
 0x821   :  { %7093 = vmatpush3.bf16.msra.mxu1 %v8036_v1  ;;  %7105 = vmatpush3.bf16.msra.mxu0 %v8036_v1 }
 0x822   :  { %7094 = vmatprep.subr.bf16.mxu1 %v7252_v61  ;;  %7106 = vmatprep.subr.bf16.mxu0 %v7252_v61 }
 0x825   :  { %7096 = vmatpush3.bf16.msra.mxu1 %v8038_v11  ;;  %7108 = vmatpush3.bf16.msra.mxu0 %v8038_v11 }
 0x826   :  { %7097 = vmatprep.subr.bf16.mxu1 %v7252_v61  ;;  %7115 = vmatprep.subr.bf16.mxu0 %v7252_v61 }
 0x828   :  { %6400 = vmatmul.mubr.msk.f32.vlgmr.msra.gmra.mrb[28].mxu1 %vm3477_vm8, %v3476_v13  ;;  %6422 = vmatmul.mubr.msk.f32.vlgmr.msra.gmra.mrb[56].mxu0 %vm3477_vm8, %v5060_v14 }
 0x829   :  { %7099 = vmatpush3.bf16.msra.mxu1 %v8036_v1  ;;  %7117 = vmatpush3.bf16.msra.mxu0 %v8036_v1 }
 0x82a   :  { %7100 = vmatprep.subr.bf16.mxu1 %v7252_v61  ;;  %7118 = vmatprep.subr.bf16.mxu0 %v7252_v61 }
 0x82b   :  { %6410 = vmatprep.mubr.msk.f32.mxu1 %vm7253_vm2, %v7254_v62  ;;  %6443 = vmatprep.mubr.msk.f32.mxu0 %vm7253_vm2, %v7254_v62 }
 0x82d   :  { %7102 = vmatpush3.bf16.msra.mxu1 %v8038_v11  ;;  %7120 = vmatpush3.bf16.msra.mxu0 %v8038_v11 }
 0x82e   :  { %7109 = vmatprep.subr.bf16.mxu1 %v7252_v61  ;;  %7127 = vmatprep.subr.bf16.mxu0 %v7252_v61 }
 0x830   :  { %6411 = vmatmul.mubr.msk.f32.vlgmr.msra.gmra.mrb[30].mxu1 %vm3477_vm8, %v5056_v15  ;;  %6444 = vmatmul.mubr.msk.f32.vlgmr.msra.gmra.mrb[58].mxu0 %vm3477_vm8, %v5068_v16  ;;  %v5091_v15 = vld [vmem:[%s8273_s9 + $0x9] ss:$0 sm:$0xff]  ;;  %v5103_v16 = vld [vmem:[%s8273_s9 + $0xc] ss:$0 sm:$0xff] }
 0x831   :  { %7111 = vmatpush3.bf16.msra.mxu1 %v8036_v1  ;;  %7129 = vmatpush3.bf16.msra.mxu0 %v8036_v1 }
 0x832   :  { %7112 = vmatprep.subr.bf16.mxu1 %v7252_v61  ;;  %7130 = vmatprep.subr.bf16.mxu0 %v7252_v61 }
 0x833   :  { %6432 = vmatprep.mubr.msk.f32.mxu1 %vm7253_vm2, %v7254_v62  ;;  %6465 = vmatprep.mubr.msk.f32.mxu0 %vm7253_vm2, %v7254_v62 }
 0x835   :  { %7114 = vmatpush3.bf16.msra.mxu1 %v8038_v11  ;;  %7132 = vmatpush3.bf16.msra.mxu0 %v8038_v11 }
 0x836   :  { %7121 = vmatprep.subr.bf16.mxu1 %v7252_v61  ;;  %7139 = vmatprep.subr.bf16.mxu0 %v7252_v61 }
 0x838   :  { %6433 = vmatmul.mubr.msk.f32.vlgmr.msra.gmra.mrb[32].mxu1 %vm3477_vm8, %v5064_v17  ;;  %6466 = vmatmul.mubr.msk.f32.vlgmr.msra.gmra.mrb[60].mxu0 %vm3477_vm8, %v5076_v18 }
 0x839   :  { %7123 = vmatpush3.bf16.msra.mxu1 %v8036_v1  ;;  %7141 = vmatpush3.bf16.msra.mxu0 %v8036_v1 }
 0x83a   :  { %7124 = vmatprep.subr.bf16.mxu1 %v7252_v61  ;;  %7142 = vmatprep.subr.bf16.mxu0 %v7252_v61 }
 0x83b   :  { %6454 = vmatprep.mubr.msk.f32.mxu1 %vm7253_vm2, %v7254_v62  ;;  %6487 = vmatprep.mubr.msk.f32.mxu0 %vm7253_vm2, %v7254_v62 }
 0x83d   :  { %7126 = vmatpush3.bf16.msra.mxu1 %v8038_v11  ;;  %7144 = vmatpush3.bf16.msra.mxu0 %v8038_v11 }
 0x83e   :  { %7133 = vmatprep.subr.bf16.mxu1 %v7252_v61  ;;  %7151 = vmatprep.subr.bf16.mxu0 %v7252_v61 }
 0x840   :  { %6455 = vmatmul.mubr.msk.f32.vlgmr.msra.gmra.mrb[34].mxu1 %vm3477_vm8, %v5072_v19  ;;  %6488 = vmatmul.mubr.msk.f32.vlgmr.msra.gmra.mrb[62].mxu0 %vm3477_vm8, %v5084_v20 }
 0x841   :  { %7135 = vmatpush3.bf16.msra.mxu1 %v8036_v1  ;;  %7153 = vmatpush3.bf16.msra.mxu0 %v8036_v1 }
 0x842   :  { %7136 = vmatprep.subr.bf16.mxu1 %v7252_v61  ;;  %7154 = vmatprep.subr.bf16.mxu0 %v7252_v61 }
 0x843   :  { %6476 = vmatprep.mubr.msk.f32.mxu1 %vm7253_vm2, %v7254_v62  ;;  %6509 = vmatprep.mubr.msk.f32.mxu0 %vm7253_vm2, %v7254_v62 }
 0x845   :  { %7138 = vmatpush3.bf16.msra.mxu1 %v8038_v11  ;;  %7156 = vmatpush3.bf16.msra.mxu0 %v8038_v11 }
 0x846   :  { %7145 = vmatprep.subr.bf16.mxu1 %v7252_v61  ;;  %7163 = vmatprep.subr.bf16.mxu0 %v7252_v61 }
 0x848   :  { %6477 = vmatmul.mubr.msk.f32.vlgmr.msra.gmra.mrb[36].mxu1 %vm3477_vm8, %v5080_v22  ;;  %6510 = vmatmul.mubr.msk.f32.vlgmr.msra.gmra.mrb[64].mxu0 %vm3477_vm8, %v5092_v23 }
 0x849   :  { %7147 = vmatpush3.bf16.msra.mxu1 %v8036_v1  ;;  %7165 = vmatpush3.bf16.msra.mxu0 %v8036_v1 }
 0x84a   :  { %7148 = vmatprep.subr.bf16.mxu1 %v7252_v61  ;;  %7166 = vmatprep.subr.bf16.mxu0 %v7252_v61 }
 0x84b   :  { %6498 = vmatprep.mubr.msk.f32.mxu1 %vm7253_vm2, %v7254_v62  ;;  %6531 = vmatprep.mubr.msk.f32.mxu0 %vm7253_vm2, %v7254_v62 }
 0x84d   :  { %7150 = vmatpush3.bf16.msra.mxu1 %v8038_v11  ;;  %7168 = vmatpush3.bf16.msra.mxu0 %v8038_v11 }
 0x84e   :  { %7157 = vmatprep.subr.bf16.mxu1 %v7252_v61  ;;  %7175 = vmatprep.subr.bf16.mxu0 %v7252_v61 }
 0x850   :  { %6499 = vmatmul.mubr.msk.f32.vlgmr.msra.gmra.mrb[38].mxu1 %vm3477_vm8, %v5088_v24  ;;  %6532 = vmatmul.mubr.msk.f32.vlgmr.msra.gmra.mrb[66].mxu0 %vm3477_vm8, %v5100_v25 }
 0x851   :  { %7159 = vmatpush3.bf16.msra.mxu1 %v8036_v1  ;;  %7177 = vmatpush3.bf16.msra.mxu0 %v8036_v1 }
 0x852   :  { %7160 = vmatprep.subr.bf16.mxu1 %v7252_v61  ;;  %7178 = vmatprep.subr.bf16.mxu0 %v7252_v61 }
 0x853   :  { %6520 = vmatprep.mubr.msk.f32.mxu1 %vm7253_vm2, %v7254_v62  ;;  %6553 = vmatprep.mubr.msk.f32.mxu0 %vm7253_vm2, %v7254_v62 }
 0x855   :  { %7162 = vmatpush3.bf16.msra.mxu1 %v8038_v11  ;;  %7180 = vmatpush3.bf16.msra.mxu0 %v8038_v11 }
 0x856   :  { %7169 = vmatprep.subr.bf16.mxu1 %v7252_v61 }
 0x858   :  { %6521 = vmatmul.mubr.msk.f32.vlgmr.msra.gmra.mrb[40].mxu1 %vm3477_vm8, %v5096_v26  ;;  %6554 = vmatmul.mubr.msk.f32.vlgmr.msra.gmra.mrb[68].mxu0 %vm3477_vm8, %v5108_v28  ;;  %v5099_v26 = vld [vmem:[%s8273_s9 + $0xb] ss:$0 sm:$0xff]  ;;  %v5111_v28 = vld [vmem:[%s8273_s9 + $0xe] ss:$0 sm:$0xff] }
 0x859   :  { %7171 = vmatpush3.bf16.msra.mxu1 %v8036_v1  ;;  %6542 = vmatprep.mubr.msk.f32.mxu1 %vm7253_vm2, %v7254_v62 }
 0x85a   :  { %7172 = vmatprep.subr.bf16.mxu1 %v7252_v61 }
 0x85d   :  { %7174 = vmatpush3.bf16.msra.mxu1 %v8038_v11 }
 0x85e   :  { %7181 = vmatprep.subr.bf16.mxu1 %v7252_v61 }
 0x860   :  { %6543 = vmatmul.mubr.msk.f32.vlgmr.msra.gmra.mrb[42].mxu1 %vm3477_vm8, %v5104_v29 }
 0x861   :  { %7183 = vmatpush3.bf16.msra.mxu1 %v8036_v1  ;;  %6564 = vmatprep.mubr.msk.f32.mxu1 %vm7253_vm2, %v7254_v62 }
 0x862   :  { %7184 = vmatprep.subr.bf16.mxu1 %v7252_v61 }
 0x865   :  { %7186 = vmatpush3.bf16.msra.mxu1 %v8038_v11 }
 0x868   :  { %6565 = vmatmul.mubr.msk.f32.vlgmr.msra.gmra.mrb[44].mxu1 %vm3477_vm8, %v5112_v30 }
 0x8fb   :  { %v3547_v34 = vpop.f32.mrb[28].mxu1  ;;  %v3722_v62 = vpop.f32.mrb[56].mxu0 }
 0x8fc   :  { %v3558_v61 = vmul.f32 %v5055_v32, %v3547_v34  ;;  %v6401_v35 = vpop.f32.mrb[29].mxu1  ;;  %v3734_v36 = vmul.f32 %v5063_v33, %v3722_v62  ;;  %v6423_v37 = vpop.f32.mrb[57].mxu0 }
 0x8fe   :  { %v3560_v38 = vsel %vm3559_vm9, %v3558_v61, 0.0  ;;  %v3735_v39 = vsel %vm3559_vm9, %v3734_v36, 0.0  ;;  %v5107_v36 = vld [vmem:[%s8273_s9 + $0xd] ss:$0 sm:$0xff] }
 0x8ff   :  { %3561 = vadd.xlane.f32.xlu0 %v3560_v38  ;;  %3736 = vadd.xlane.f32.xlu1 %v3735_v39 }
 0x903   :  { %v3634_v43 = vpop.f32.mrb[30].mxu1  ;;  %v3898_v44 = vpop.f32.mrb[58].mxu0 }
 0x904   :  { %v3646_v45 = vmul.f32 %v5059_v41, %v3634_v43  ;;  %v6412_v46 = vpop.f32.mrb[31].mxu1  ;;  %v3910_v47 = vmul.f32 %v5071_v42, %v3898_v44  ;;  %v6445_v48 = vpop.f32.mrb[59].mxu0  ;;  %v5115_v42 = vld [vmem:[%s8273_s9 + $0xf] ss:$0 sm:$0xff] }
 0x906   :  { %v3647_v50 = vsel %vm3559_vm9, %v3646_v45, 0.0  ;;  %v3911_v51 = vsel %vm3559_vm9, %v3910_v47, 0.0  ;;  %v16_v47 = vstv %s8274_s10 }
 0x907   :  { %3648 = vadd.xlane.f32.xlu0 %v3647_v50  ;;  %17 = vst [vmem:[#allocation2] sm:$0x1] %v16_v47 }
 0x90b   :  { %v3810_v58 = vpop.f32.mrb[32].mxu1  ;;  %3912 = vadd.xlane.f32.xlu0 %v3911_v51  ;;  %v4074_v3 = vpop.f32.mrb[60].mxu0 }
 0x90c   :  { %v3822_v12 = vmul.f32 %v5067_v40, %v3810_v58  ;;  %v6434_v21 = vpop.f32.mrb[33].mxu1  ;;  %v4086_v31 = vmul.f32 %v5079_v49, %v4074_v3  ;;  %v6467_v27 = vpop.f32.mrb[61].mxu0 }
 0x90e   :  { %v3823_v52 = vsel %vm3559_vm9, %v3822_v12, 0.0  ;;  %v4087_v53 = vsel %vm3559_vm9, %v4086_v31, 0.0 }
 0x90f   :  { %3824 = vadd.xlane.f32.xlu1 %v3823_v52  ;;  %4088 = vadd.xlane.f32.xlu0 %v4087_v53 }
 0x913   :  { %v3986_v56 = vpop.f32.mrb[34].mxu1  ;;  %v4250_v57 = vpop.f32.mrb[62].mxu0 }
 0x914   :  { %v3998_v59 = vmul.f32 %v5075_v54, %v3986_v56  ;;  %v6456_v60 = vpop.f32.mrb[35].mxu1  ;;  %v4262_v63 = vmul.f32 %v5087_v55, %v4250_v57  ;;  %v6489_v0 = vpop.f32.mrb[63].mxu0 }
 0x916   :  { %v3999_v2 = vsel %vm3559_vm9, %v3998_v59, 0.0  ;;  %v4263_v5 = vsel %vm3559_vm9, %v4262_v63, 0.0 }
 0x917   :  { %4000 = vadd.xlane.f32.xlu1 %v3999_v2  ;;  %4264 = vadd.xlane.f32.xlu0 %v4263_v5 }
 0x91b   :  { %v4162_v8 = vpop.f32.mrb[36].mxu1  ;;  %v4426_v9 = vpop.f32.mrb[64].mxu0 }
 0x91c   :  { %v4174_v10 = vmul.f32 %v5083_v6, %v4162_v8  ;;  %v6478_v4 = vpop.f32.mrb[37].mxu1  ;;  %v4438_v1 = vmul.f32 %v5095_v7, %v4426_v9  ;;  %v6511_v11 = vpop.f32.mrb[65].mxu0 }
 0x91e   :  { %v4175_v13 = vsel %vm3559_vm9, %v4174_v10, 0.0  ;;  %v4439_v14 = vsel %vm3559_vm9, %v4438_v1, 0.0  ;;  %v5116_v1 = vld [vmem:[#allocation2] ss:$0 sm:$0xff] }
 0x91f   :  { %4176 = vadd.xlane.f32.xlu1 %v4175_v13  ;;  %4440 = vadd.xlane.f32.xlu0 %v4439_v14 }
 0x923   :  { %v4338_v17 = vpop.f32.mrb[38].mxu1  ;;  %v4602_v18 = vpop.f32.mrb[66].mxu0 }
 0x924   :  { %v4350_v19 = vmul.f32 %v5091_v15, %v4338_v17  ;;  %v6500_v20 = vpop.f32.mrb[39].mxu1  ;;  %v4614_v22 = vmul.f32 %v5103_v16, %v4602_v18  ;;  %v6533_v23 = vpop.f32.mrb[67].mxu0 }
 0x926   :  { %v4351_v24 = vsel %vm3559_vm9, %v4350_v19, 0.0  ;;  %v4615_v25 = vsel %vm3559_vm9, %v4614_v22, 0.0 }
 0x927   :  { %4352 = vadd.xlane.f32.xlu1 %v4351_v24  ;;  %4616 = vadd.xlane.f32.xlu0 %v4615_v25 }
 0x92b   :  { %v4514_v29 = vpop.f32.mrb[40].mxu1  ;;  %v4778_v30 = vpop.f32.mrb[68].mxu0 }
 0x92c   :  { %v4526_v32 = vmul.f32 %v5099_v26, %v4514_v29  ;;  %v6522_v33 = vpop.f32.mrb[41].mxu1  ;;  %v4790_v34 = vmul.f32 %v5111_v28, %v4778_v30  ;;  %v6555_v62 = vpop.f32.mrb[69].mxu0 }
 0x92e   :  { %v4527_v61 = vsel %vm3559_vm9, %v4526_v32, 0.0  ;;  %v4791_v35 = vsel %vm3559_vm9, %v4790_v34, 0.0 }
 0x92f   :  { %4528 = vadd.xlane.f32.xlu1 %v4527_v61  ;;  %4792 = vadd.xlane.f32.xlu0 %v4791_v35 }
 0x933   :  { %v4690_v37 = vpop.f32.mrb[42].mxu1 }
 0x934   :  { %v4702_v38 = vmul.f32 %v5107_v36, %v4690_v37  ;;  %v6544_v39 = vpop.f32.mrb[43].mxu1 }
 0x936   :  { %v4703_v41 = vsel %vm3559_vm9, %v4702_v38, 0.0 }
 0x937   :  { %4704 = vadd.xlane.f32.xlu1 %v4703_v41 }
 0x93b   :  { %v4866_v43 = vpop.f32.mrb[44].mxu1 }
 0x93c   :  { %v4878_v44 = vmul.f32 %v5115_v42, %v4866_v43  ;;  %v6566_v45 = vpop.f32.mrb[45].mxu1 }
 0x93e   :  { %v4879_v46 = vsel %vm3559_vm9, %v4878_v44, 0.0 }
 0x93f   :  { %4880 = vadd.xlane.f32.xlu1 %v4879_v46 }
 0x98c   :  { %v3562_v48 = vpop.xlane.xlu0 %3561  ;;  %v3737_v51 = vpop.xlane.xlu1 %3736 }
 0x994   :  { %v3649_v50 = vpop.xlane.xlu0 %3648 }
 0x995   :  { %v3650_v40 = vadd.f32 %v3649_v50, %v3562_v48 }
 0x997   :  { %v3738_v58 = vadd.f32 %v3737_v51, %v3650_v40 }
 0x998   :  { %v3913_v12 = vpop.xlane.xlu0 %3912 }
 0x99c   :  { %v3825_v49 = vpop.xlane.xlu1 %3824  ;;  %v4089_v52 = vpop.xlane.xlu0 %4088 }
 0x99d   :  { %v3826_v3 = vadd.f32 %v3825_v49, %v3738_v58 }
 0x99f   :  { %v3914_v31 = vadd.f32 %v3913_v12, %v3826_v3 }
 0x9a4   :  { %v4001_v21 = vpop.xlane.xlu1 %4000  ;;  %v4265_v56 = vpop.xlane.xlu0 %4264 }
 0x9a5   :  { %v4002_v27 = vadd.f32 %v4001_v21, %v3914_v31 }
 0x9a7   :  { %v4090_v54 = vadd.f32 %v4089_v52, %v4002_v27 }
 0x9ac   :  { %v4177_v53 = vpop.xlane.xlu1 %4176  ;;  %v4441_v63 = vpop.xlane.xlu0 %4440 }
 0x9ad   :  { %v4178_v55 = vadd.f32 %v4177_v53, %v4090_v54 }
 0x9af   :  { %v4266_v59 = vadd.f32 %v4265_v56, %v4178_v55 }
 0x9b4   :  { %v4353_v57 = vpop.xlane.xlu1 %4352  ;;  %v4617_v6 = vpop.xlane.xlu0 %4616 }
 0x9b5   :  { %v4354_v60 = vadd.f32 %v4353_v57, %v4266_v59 }
 0x9b7   :  { %v4442_v2 = vadd.f32 %v4441_v63, %v4354_v60 }
 0x9bc   :  { %v4529_v0 = vpop.xlane.xlu1 %4528  ;;  %v4793_v10 = vpop.xlane.xlu0 %4792 }
 0x9bd   :  { %v4530_v5 = vadd.f32 %v4529_v0, %v4442_v2 }
 0x9bf   :  { %v4618_v8 = vadd.f32 %v4617_v6, %v4530_v5 }
 0x9c4   :  { %v4705_v7 = vpop.xlane.xlu1 %4704 }
 0x9c5   :  { %v4706_v9 = vadd.f32 %v4705_v7, %v4618_v8 }
 0x9c7   :  { %v4794_v4 = vadd.f32 %v4793_v10, %v4706_v9 }
 0x9cc   :  { %v4881_v11 = vpop.xlane.xlu1 %4880 }
 0x9cd   :  { %v4882_v13 = vadd.f32 %v4881_v11, %v4794_v4 }
 0x9cf   :  { %v4890_v14 = vadd.f32 %v5116_v1, %v4882_v13 }
 0x9d1   :  { %4892 = vst.msk [vmem:[%s8275_s11] sm:$0x3] %vm4891_vm10, %v4890_v14 }

</bundles_post_ra>
